<compile_context>
chip_gen: v5e
topology: v5e:2x2
jax: 0.10.0
libtpu: 0.0.40
codegen_flags: <defaults>
</compile_context>

<pallas_src>
import jax
import jax.numpy as jnp
from jax.experimental import pallas as pl
from jax.experimental.pallas import tpu as pltpu

D_IN, D_H1, D_H2, D_OUT = 1280, 640, 320, 2
D_H2_PAD = 384     # 320 padded up to a multiple of 128 lanes
D_OUT_PAD = 128    # 2 padded up to one full lane register

_HIGHEST = jax.lax.Precision.HIGHEST


def _round_up(x, m):
    return (x + m - 1) // m * m


# ---------------------------------------------------------------------------
# Kernel 1: streaming masked mean pooling over tokens [1 : tokens_len - 1].
# Grid = (batch_tiles, token_tiles); token axis is an "arbitrary" reduction
# accumulated into the resident (tb, 1, 1280) f32 output block.
# ---------------------------------------------------------------------------
def _masked_mean_kernel(lens_ref, rep_ref, pooled_ref):
    li = pl.program_id(1)                     # token-tile index (reduction axis)
    tb, tl, _ = rep_ref.shape

    @pl.when(li == 0)
    def _init():
        pooled_ref[...] = jnp.zeros_like(pooled_ref)

    rep = rep_ref[...]                                        # (tb, tl, D) native dtype
    # tokens_len - 2 per row, shaped (tb, 1, 1) for broadcasting.
    lim = jnp.reshape(lens_ref[...] - 2.0, (tb, 1, 1))

    # Global token positions for this tile; keep tokens 1 .. tokens_len-2
    # (drop BOS / EOS / padding).
    pos = (jax.lax.broadcasted_iota(jnp.int32, (tb, 1, tl), 2)
           + li * tl).astype(jnp.float32)
    mask = jnp.logical_and(pos >= 1.0, pos <= lim).astype(rep.dtype)   # (tb,1,tl)

    # Masked partial sum on the MXU (batched (1,tl)x(tl,1280) matmuls with f32
    # accumulation) — keeps the VPU/XLU off the critical path and avoids any
    # full-tile f32 cast.  HIGHEST only matters for an f32 rep path (keeps the
    # sum exact); for bf16 rep the MXU is already exact for 0/1 masks.
    prec = _HIGHEST if rep.dtype == jnp.float32 else None
    pooled_ref[...] += jnp.einsum('bql,bld->bqd', mask, rep,
                                  preferred_element_type=jnp.float32,
                                  precision=prec)

    @pl.when(li == pl.num_programs(1) - 1)
    def _finalize():
        # Exact mean; clamp the denominator so tokens_len <= 2 rows (and the
        # zero-length batch-padding rows) stay finite instead of inf/NaN.
        pooled_ref[...] = pooled_ref[...] / jnp.maximum(lim, 1.0)


# ---------------------------------------------------------------------------
# Kernel 2: the 3-layer MLP, run once with M = padded batch rows.
# (Dropout(0.2) is identity at inference.)
# ---------------------------------------------------------------------------
def _mlp_kernel(x_ref, w1_ref, b1_ref, w2_ref, b2_ref, w3_ref, b3_ref,
                y_ref, emb_ref):
    x = x_ref[...]                                            # (tbm, 1280) f32
    h1 = jnp.maximum(
        jnp.dot(x, w1_ref[...], precision=_HIGHEST,
                preferred_element_type=jnp.float32) + b1_ref[...], 0.0)
    h2 = jnp.maximum(
        jnp.dot(h1, w2_ref[...], precision=_HIGHEST,
                preferred_element_type=jnp.float32) + b2_ref[...], 0.0)
    emb_ref[...] = h2                                         # (tbm, 384); cols 320: are 0
    y_ref[...] = (jnp.dot(h2, w3_ref[...], precision=_HIGHEST,
                          preferred_element_type=jnp.float32)
                  + b3_ref[...])                              # (tbm, 128); cols 2: are 0


def amp_predictor(rep, batch_len, params, *, tb=8, tl=512, tbm=512,
                  vmem_limit_bytes=48 << 20):
    """rep: (B, L, 1280) bf16 (preferred) or f32 ESM layer-33 representations;
    batch_len: (B,) int tokens_len per sequence; params: PyTorch Linear weights
    stored transposed as (in, out) plus (1, out) biases.  Returns (y, emb)."""
    B, L, D = rep.shape
    assert D == D_IN

    # --- tile sizes & padding (16-bit rep needs 16-row sublane tiles) --------
    sub = max(8, 32 // rep.dtype.itemsize)          # 8 for f32, 16 for bf16
    tl = max(sub, _round_up(min(tl, _round_up(L, sub)), sub))
    Lp = _round_up(L, tl)
    Bp = _round_up(B, tb)
    if (Bp, Lp) != (B, L):
        # Padded tokens fall outside [1, lens-2] so the mask drops them;
        # padded batch rows get lens=0 (empty mask, clamped denominator) and
        # are sliced off below.
        rep = jnp.pad(rep, ((0, Bp - B), (0, Lp - L), (0, 0)))
    lens = jnp.zeros((Bp, 1), dtype=jnp.float32)
    lens = lens.at[:B, 0].set(batch_len.astype(jnp.float32))

    # --- streaming masked-mean pooling ---------------------------------------
    rep_bytes = Bp * Lp * D_IN * rep.dtype.itemsize
    cost = pl.CostEstimate(flops=2 * Bp * Lp * D_IN, transcendentals=0,
                           bytes_accessed=rep_bytes + Bp * D_IN * 4 + Bp * 4)

    pooled = pl.pallas_call(
        _masked_mean_kernel,
        out_shape=jax.ShapeDtypeStruct((Bp, 1, D_IN), jnp.float32),
        grid=(Bp // tb, Lp // tl),
        in_specs=[
            pl.BlockSpec((tb, 1), lambda bi, li: (bi, 0)),             # lens
            pl.BlockSpec((tb, tl, D_IN), lambda bi, li: (bi, li, 0)),  # rep tiles
        ],
        out_specs=pl.BlockSpec((tb, 1, D_IN), lambda bi, li: (bi, 0, 0)),
        compiler_params=pltpu.CompilerParams(
            dimension_semantics=("parallel", "arbitrary"),
            vmem_limit_bytes=vmem_limit_bytes,
        ),
        cost_estimate=cost,
    )(lens, rep)

    pooled = pooled.reshape(Bp, D_IN)

    # --- MLP: one call with M = padded batch rows -----------------------------
    tbm = min(tbm, Bp)                          # Bp is a multiple of 8
    Bm = _round_up(Bp, tbm)
    if Bm != Bp:
        pooled = jnp.pad(pooled, ((0, Bm - Bp), (0, 0)))

    # Lane-dense weight padding (zeros -> results unchanged).
    w2p = jnp.pad(params["w2"], ((0, 0), (0, D_H2_PAD - D_H2)))
    b2p = jnp.pad(params["b2"], ((0, 0), (0, D_H2_PAD - D_H2)))
    w3p = jnp.pad(params["w3"], ((0, D_H2_PAD - D_H2), (0, D_OUT_PAD - D_OUT)))
    b3p = jnp.pad(params["b3"], ((0, 0), (0, D_OUT_PAD - D_OUT)))

    const = lambda i: (0, 0)                    # weights: resident, never re-fetched

    y_pad, emb_pad = pl.pallas_call(
        _mlp_kernel,
        out_shape=(
            jax.ShapeDtypeStruct((Bm, D_OUT_PAD), jnp.float32),
            jax.ShapeDtypeStruct((Bm, D_H2_PAD), jnp.float32),
        ),
        grid=(Bm // tbm,),
        in_specs=[
            pl.BlockSpec((tbm, D_IN), lambda i: (i, 0)),
            pl.BlockSpec((D_IN, D_H1), const),
            pl.BlockSpec((1, D_H1), const),
            pl.BlockSpec((D_H1, D_H2_PAD), const),
            pl.BlockSpec((1, D_H2_PAD), const),
            pl.BlockSpec((D_H2_PAD, D_OUT_PAD), const),
            pl.BlockSpec((1, D_OUT_PAD), const),
        ],
        out_specs=(
            pl.BlockSpec((tbm, D_OUT_PAD), lambda i: (i, 0)),
            pl.BlockSpec((tbm, D_H2_PAD), lambda i: (i, 0)),
        ),
        compiler_params=pltpu.CompilerParams(
            dimension_semantics=("parallel",),
            vmem_limit_bytes=64 << 20,
        ),
    )(pooled, params["w1"], params["b1"], w2p, b2p, w3p, b3p)

    return y_pad[:B, :D_OUT], emb_pad[:B, :D_H2]


def reference(rep_f32, batch_len, params):
    """Pure-JAX reference mirroring the PyTorch forward (Dropout = identity)."""
    outs_e, outs_y = [], []
    for i in range(rep_f32.shape[0]):
        tlen = int(batch_len[i])
        pooled = jnp.mean(rep_f32[i, 1:tlen - 1], axis=0)
        h1 = jnp.maximum(
            jnp.dot(pooled, params["w1"], precision=_HIGHEST) + params["b1"][0], 0.0)
        h2 = jnp.maximum(
            jnp.dot(h1, params["w2"], precision=_HIGHEST) + params["b2"][0], 0.0)
        y = jnp.dot(h2, params["w3"], precision=_HIGHEST) + params["b3"][0]
        outs_e.append(h2)
        outs_y.append(y)
    return jnp.stack(outs_y), jnp.stack(outs_e)


if __name__ == "__main__":
    key = jax.random.PRNGKey(0)
    k_rep, k1, k2, k3, kb1, kb2, kb3 = jax.random.split(key, 7)

    B, L = 2, 16                                  # small demo shapes
    rep_f32 = jax.random.normal(k_rep, (B, L, D_IN), dtype=jnp.float32)
    # Cast once in HBM: the kernel streams rep in bf16 (2x less HBM traffic),
    # accumulation stays f32.
    rep_bf16 = rep_f32.astype(jnp.bfloat16)
    batch_len = jnp.array([16, 9], dtype=jnp.int32)   # tokens_len per sequence

    # deterministic synthetic parameters (PyTorch Linear weights, transposed)
    params = {
        "w1": jax.random.normal(k1, (D_IN, D_H1), dtype=jnp.float32) * 0.02,
        "b1": jax.random.normal(kb1, (1, D_H1), dtype=jnp.float32) * 0.02,
        "w2": jax.random.normal(k2, (D_H1, D_H2), dtype=jnp.float32) * 0.02,
        "b2": jax.random.normal(kb2, (1, D_H2), dtype=jnp.float32) * 0.02,
        "w3": jax.random.normal(k3, (D_H2, D_OUT), dtype=jnp.float32) * 0.02,
        "b3": jax.random.normal(kb3, (1, D_OUT), dtype=jnp.float32) * 0.02,
    }

    y, emb = amp_predictor(rep_bf16, batch_len, params)
    jax.block_until_ready((y, emb))

    # Reference consumes the same bf16-quantized representations (in f32), so
    # the only remaining differences are f32 summation order / exact matmuls.
    y_ref, emb_ref = reference(rep_bf16.astype(jnp.float32), batch_len, params)
    assert jnp.allclose(y, y_ref, atol=1e-3, rtol=1e-3), (y, y_ref)
    assert jnp.allclose(emb, emb_ref, atol=1e-3, rtol=1e-3)

    print("KERNEL_OK")
</pallas_src>

<mosaic_0001>
module attributes {stable_mosaic.version = 11 : i64} {
  func.func @_masked_mean_kernel(%arg0: i32, %arg1: i32, %arg2: memref<8x1xf32, #tpu.memory_space<vmem>>, %arg3: memref<8x16x1280xbf16, #tpu.memory_space<vmem>>, %arg4: memref<8x1x1280xf32, #tpu.memory_space<vmem>>) attributes {dimension_semantics = [#tpu.dimension_semantics<parallel>, #tpu.dimension_semantics<arbitrary>], iteration_bounds = array<i64: 1, 1>, scalar_prefetch = 0 : i64, scratch_operands = 0 : i64, tpu.core_type = #tpu.core_type<tc>, window_params = [{transform_indices = @transform_0, window_bounds = array<i64: 8, 1>}, {transform_indices = @transform_1, window_bounds = array<i64: 8, 16, 1280>}, {transform_indices = @transform_2, window_bounds = array<i64: 8, 1, 1280>}]} {
    %c0_i32 = arith.constant 0 : i32
    %0 = arith.cmpi eq, %arg1, %c0_i32 : i32
    %1 = arith.extui %0 : i1 to i32
    %c0_i32_0 = arith.constant 0 : i32
    %2 = arith.cmpi ne, %1, %c0_i32_0 : i32
    scf.if %2 {
      %cst_15 = arith.constant 0.000000e+00 : f32
      %28 = vector.broadcast %cst_15 : f32 to vector<8x1x1280xf32>
      %c0_16 = arith.constant 0 : index
      %c0_17 = arith.constant 0 : index
      %c0_18 = arith.constant 0 : index
      %29 = vector.load %arg4[%c0_16, %c0_17, %c0_18] : memref<8x1x1280xf32, #tpu.memory_space<vmem>>, vector<8x1x1280xf32>
      tpu.vector_store %arg4[%c0_16, %c0_17, %c0_18], %28 {strides = array<i32>} : memref<8x1x1280xf32, #tpu.memory_space<vmem>>, vector<8x1x1280xf32>,
    } else {
    }
    %c0 = arith.constant 0 : index
    %c0_1 = arith.constant 0 : index
    %c0_2 = arith.constant 0 : index
    %3 = vector.load %arg3[%c0, %c0_1, %c0_2] : memref<8x16x1280xbf16, #tpu.memory_space<vmem>>, vector<8x16x1280xbf16>
    %c0_3 = arith.constant 0 : index
    %c0_4 = arith.constant 0 : index
    %4 = vector.load %arg2[%c0_3, %c0_4] : memref<8x1xf32, #tpu.memory_space<vmem>>, vector<8x1xf32>
    %cst = arith.constant 2.000000e+00 : f32
    %5 = vector.broadcast %cst : f32 to vector<8x1xf32>
    %6 = arith.subf %4, %5 : vector<8x1xf32>
    %7 = vector.shape_cast %6 : vector<8x1xf32> to vector<8x1x1xf32>
    %8 = tpu.iota {dimensions = array<i32: 2>} : vector<8x1x16xi32>
    %c16_i32 = arith.constant 16 : i32
    %9 = arith.muli %arg1, %c16_i32 : i32
    %10 = vector.broadcast %9 : i32 to vector<8x1x16xi32>
    %11 = arith.addi %8, %10 : vector<8x1x16xi32>
    %12 = arith.sitofp %11 : vector<8x1x16xi32> to vector<8x1x16xf32>
    %cst_5 = arith.constant 1.000000e+00 : f32
    %13 = vector.broadcast %cst_5 : f32 to vector<8x1x16xf32>
    %14 = arith.cmpf oge, %12, %13 : vector<8x1x16xf32>
    %15 = vector.broadcast %7 : vector<8x1x1xf32> to vector<8x1x16xf32>
    %16 = arith.cmpf ole, %12, %15 : vector<8x1x16xf32>
    %17 = arith.andi %14, %16 : vector<8x1x16xi1>
    %18 = arith.extui %17 : vector<8x1x16xi1> to vector<8x1x16xi32>
    %19 = arith.sitofp %18 : vector<8x1x16xi32> to vector<8x1x16xf32>
    %20 = arith.truncf %19 : vector<8x1x16xf32> to vector<8x1x16xbf16>
    %c0_6 = arith.constant 0 : index
    %c0_7 = arith.constant 0 : index
    %c0_8 = arith.constant 0 : index
    %21 = vector.load %arg4[%c0_6, %c0_7, %c0_8] : memref<8x1x1280xf32, #tpu.memory_space<vmem>>, vector<8x1x1280xf32>
    "tpu.trace_start"() <{level = 10 : i32, message = "bql,bld->bqd"}> : () -> ()
    %cst_9 = arith.constant dense<0.000000e+00> : vector<8x1x1280xf32>
    %22 = tpu.matmul %20, %3, %cst_9 {dimension_numbers = #tpu.dot_dimension_numbers<[2], [1], [1], [2], [0, 0, 0, 1, 1, 2], [0], [0]>} : vector<8x1x16xbf16>, vector<8x16x1280xbf16>, vector<8x1x1280xf32> -> vector<8x1x1280xf32>
    "tpu.trace_stop"() : () -> ()
    %23 = arith.addf %21, %22 : vector<8x1x1280xf32>
    %c0_10 = arith.constant 0 : index
    %c0_11 = arith.constant 0 : index
    %c0_12 = arith.constant 0 : index
    %24 = vector.load %arg4[%c0_10, %c0_11, %c0_12] : memref<8x1x1280xf32, #tpu.memory_space<vmem>>, vector<8x1x1280xf32>
    tpu.vector_store %arg4[%c0_10, %c0_11, %c0_12], %23 {strides = array<i32>} : memref<8x1x1280xf32, #tpu.memory_space<vmem>>, vector<8x1x1280xf32>,
    %c0_i32_13 = arith.constant 0 : i32
    %25 = arith.cmpi eq, %arg1, %c0_i32_13 : i32
    %26 = arith.extui %25 : i1 to i32
    %c0_i32_14 = arith.constant 0 : i32
    %27 = arith.cmpi ne, %26, %c0_i32_14 : i32
    scf.if %27 {
      %c0_15 = arith.constant 0 : index
      %c0_16 = arith.constant 0 : index
      %c0_17 = arith.constant 0 : index
      %28 = vector.load %arg4[%c0_15, %c0_16, %c0_17] : memref<8x1x1280xf32, #tpu.memory_space<vmem>>, vector<8x1x1280xf32>
      %cst_18 = arith.constant 1.000000e+00 : f32
      %29 = vector.broadcast %cst_18 : f32 to vector<8x1x1xf32>
      %30 = arith.maximumf %7, %29 : vector<8x1x1xf32>
      %31 = vector.broadcast %30 : vector<8x1x1xf32> to vector<8x1x1280xf32>
      %32 = arith.divf %28, %31 : vector<8x1x1280xf32>
      %c0_19 = arith.constant 0 : index
      %c0_20 = arith.constant 0 : index
      %c0_21 = arith.constant 0 : index
      %33 = vector.load %arg4[%c0_19, %c0_20, %c0_21] : memref<8x1x1280xf32, #tpu.memory_space<vmem>>, vector<8x1x1280xf32>
      tpu.vector_store %arg4[%c0_19, %c0_20, %c0_21], %32 {strides = array<i32>} : memref<8x1x1280xf32, #tpu.memory_space<vmem>>, vector<8x1x1280xf32>,
    } else {
    }
    return
  }
  func.func @transform_0(%arg0: i32, %arg1: i32) -> (i32, i32) {
    %c0_i32 = arith.constant 0 : i32
    %c0_i32_0 = arith.constant 0 : i32
    return %arg0, %c0_i32 : i32, i32
  }
  func.func @transform_1(%arg0: i32, %arg1: i32) -> (i32, i32, i32) {
    %c0_i32 = arith.constant 0 : i32
    %c0_i32_0 = arith.constant 0 : i32
    return %arg0, %arg1, %c0_i32 : i32, i32, i32
  }
  func.func @transform_2(%arg0: i32, %arg1: i32) -> (i32, i32, i32) {
    %c0_i32 = arith.constant 0 : i32
    %c0_i32_0 = arith.constant 0 : i32
    %c0_i32_1 = arith.constant 0 : i32
    return %arg0, %c0_i32, %c0_i32_0 : i32, i32, i32
  }
}

</mosaic_0001>

<bundles_post_ra>
// kernel: tpu_custom_call.1
= control target key start
LH: loop header
LB: loop body
LE: loop exit
PB: predicated region body
PF: predicated region fallthrough
CT: control target
= control target key end

     0   :  { %7 = vsyncpa [#allocation3], 0  ;;  %s3279_s0 = inlined_call_operand.vmem [shape: f32[8,1], index: 0, kind: input, shape index: {}]   ;;  %s3280_s1 = inlined_call_operand.hbm [shape: bf16[8,16,1280], index: 1, kind: input, shape index: {}]   ;;  %s3281_s2 = inlined_call_operand.hbm [shape: f32[8,1,1280], index: 2, kind: output, shape index: {}]  }
   0x1   :  { %8 = vsyncpa [#allocation4], 0  ;;  %s15_s11 = sshll.u32 %s3280_s1, 4  ;;  %s2791_s12 = smov [#allocation2]   ;;  %s16_s11 = int_to_ptr.hbm [resolvable:$true] %s15_s11 }
   0x2   :  { %s17_s13 = sshll.u32 %s2791_s12, 4  ;;  %s2792_s14 = smov 640   ;;  %s18_s13 = int_to_ptr.vmem [resolvable:$true] %s17_s13 }
   0x3   :  { %s2793_s15 = smov 40  }
   0x4   :  { %23 = dma.hbm_to_vmem [thread:$0]  %s16_s11, 10240, %s18_s13, [#allocation3], %s2792_s14, %s2792_s14, %s2793_s15  }
   0x5   :  { %2787 = dma.done.wait [#allocation3], 10240  }
   0x6   :  { %2788 = vsyncadd [#allocation3], 4294957056  ;;  %v2794_v0 = vmov 0   ;;  %v133_v1 = vld [vmem:[%s3279_s0] sm:$0xff]  ;;  %v34_v8 = vlaneseq  ;;  %v2795_v10 = vmov 0.0   ;;  %vm303_vm4 = vcmask 130048  }
   0x7   :  { %2720 = vset.pattern.permute.xlu0 %v2794_v0  ;;  %2721 = vset.pattern.permute.xlu1 %v2794_v0  ;;  %v2820_v2 = vadd.f32 -2.0, %v133_v1  ;;  %v2234_v18 = vld [vmem:[#allocation2] sm:$0xf]  ;;  %v2637_v19 = vld [vmem:[#allocation2 + $0x24] sm:$0xf0]  ;;  %vm1864_vm14 = vcmask 1042434  }
   0x8   :  { %2722 = vset.pattern.permute.xlu2 %v2794_v0  ;;  %vm2830_vm0 = vcmp.lt.s32.totalorder %v34_v8, 256  ;;  %v2632_v20 = vld [vmem:[#allocation2 + $0x4] sm:$0xf]  ;;  %v2235_v21 = vor.u32 %v2637_v19, %v2234_v18  ;;  %v2236_v22 = vld [vmem:[#allocation2 + $0x28] sm:$0xf0]  ;;  %v151_v42 = vand.u32 127, %v34_v8 }
   0x9   :  { %158 = vperm.xlu0 %2720, %v2820_v2   ;;  %v139_v3 = vrot.slane %v2820_v2, 4  ;;  %v137_v4 = vrot.slane %v2820_v2, 2  ;;  %v136_v5 = vrot.slane %v2820_v2, 1  ;;  %v138_v6 = vrot.slane %v2820_v2, 3  ;;  %38 = vst.msk [vmem:[#allocation5 + $0x8] sm:$0x3] %vm2830_vm0, %v2795_v10 }
   0xa   :  { %v140_v7 = vrot.slane %v2820_v2, 5  ;;  %v141_v11 = vrot.slane %v2820_v2, 6  ;;  %40 = vst.msk [vmem:[#allocation5 + $0x12] sm:$0x3] %vm2830_vm0, %v2795_v10  ;;  %v142_v12 = vrot.slane %v2820_v2, 7  ;;  %v2239_v25 = vor.u32 %v2632_v20, %v2236_v22  ;;  %314 = vmatpush.bf16.msra.mxu0 %v2235_v21  ;;  %s2796_s0 = smov [#allocation5]  }
   0xb   :  { %168 = vperm.xlu1 %2721, %v137_v4   ;;  %178 = vperm.xlu2 %2722, %v139_v3   ;;  %42 = vst.msk [vmem:[#allocation5 + $0x1c] sm:$0x3] %vm2830_vm0, %v2795_v10  ;;  %v2005_v13 = vmax.f32 %v136_v5, 1.0  ;;  %v2006_v14 = vmax.f32 %v137_v4, 1.0  ;;  %v2008_v15 = vmax.f32 %v139_v3, 1.0  ;;  %v2862_v43 = vcvt.s32.f32 %v151_v42  ;;  %s2208_s1 = sshll.u32 %s2796_s0, 4  ;;  %s2209_s1 = int_to_ptr.vmem [resolvable:$true] %s2208_s1 }
   0xc   :  { %44 = vst.msk [vmem:[#allocation5 + $0x26] sm:$0x3] %vm2830_vm0, %v2795_v10  ;;  %v2009_v16 = vmax.f32 %v140_v7, 1.0  ;;  %v2011_v17 = vmax.f32 %v142_v12, 1.0  ;;  %v2242_v23 = vld [vmem:[#allocation2 + $0x8] sm:$0xf]  ;;  %327 = vmatpush.bf16.msra.mxu1 %v2239_v25 }
   0xd   :  { %46 = vst.msk [vmem:[#allocation5 + $0x30] sm:$0x3] %vm2830_vm0, %v2795_v10  ;;  %v2638_v24 = vld [vmem:[#allocation2 + $0x2c] sm:$0xf0]  ;;  %v2633_v27 = vld [vmem:[#allocation2 + $0xc] sm:$0xf] }
   0xe   :  { %48 = vst.msk [vmem:[#allocation5 + $0x3a] sm:$0x3] %vm2830_vm0, %v2795_v10  ;;  %v2243_v26 = vor.u32 %v2638_v24, %v2242_v23  ;;  %v2244_v28 = vld [vmem:[#allocation2 + $0x30] sm:$0xf0]  ;;  %v2635_v30 = vld [vmem:[#allocation2 + $0x1c] sm:$0xf] }
   0xf   :  { %50 = vst.msk [vmem:[#allocation5 + $0x44] sm:$0x3] %vm2830_vm0, %v2795_v10  ;;  %v2247_v29 = vor.u32 %v2633_v27, %v2244_v28  ;;  %v2260_v31 = vld [vmem:[#allocation2 + $0x40] sm:$0xf0]  ;;  %v2258_v32 = vld [vmem:[#allocation2 + $0x18] sm:$0xf] }
  0x10   :  { %52 = vst.msk [vmem:[#allocation5 + $0x4e] sm:$0x3] %vm2830_vm0, %v2795_v10  ;;  %340 = vmatpush.bf16.msra.mxu2 %v2243_v26  ;;  %v2263_v33 = vor.u32 %v2635_v30, %v2260_v31  ;;  %v2640_v34 = vld [vmem:[#allocation2 + $0x3c] sm:$0xf0]  ;;  %v2250_v35 = vld [vmem:[#allocation2 + $0x10] sm:$0xf] }
  0x11   :  { %163 = vperm.xlu0 %2720, %v136_v5   ;;  %353 = vmatpush.bf16.msra.mxu3 %v2247_v29  ;;  %v2639_v36 = vld [vmem:[#allocation2 + $0x34] sm:$0xf0]  ;;  %v2259_v37 = vor.u32 %v2640_v34, %v2258_v32  ;;  %v2634_v39 = vld [vmem:[#allocation2 + $0x14] sm:$0xf]  ;;  %v2252_v40 = vld [vmem:[#allocation2 + $0x38] sm:$0xf0] }
  0x12   :  { %v2251_v38 = vor.u32 %v2639_v36, %v2250_v35  ;;  %v2255_v41 = vor.u32 %v2634_v39, %v2252_v40  ;;  %vm156_vm1 = vcmp.ge.f32.partialorder %v2862_v43, 1.0  ;;  %v2642_v46 = vld [vmem:[#allocation2 + $0x54] sm:$0xf]  ;;  %v2286_v47 = vld [vmem:[#allocation2 + $0x78] sm:$0xf0]  ;;  %v2004_v60 = vmax.f32 %v2820_v2, 1.0 }
  0x13   :  { %173 = vperm.xlu1 %2721, %v138_v6   ;;  %183 = vperm.xlu2 %2722, %v140_v7   ;;  %v2284_v48 = vld [vmem:[#allocation2 + $0x50] sm:$0xf]  ;;  %v2647_v49 = vld [vmem:[#allocation2 + $0x74] sm:$0xf0]  ;;  %v2266_v50 = vld [vmem:[#allocation2 + $0x20] sm:$0xf]  ;;  %v2289_v55 = vor.u32 %v2642_v46, %v2286_v47 }
  0x14   :  { %392 = vmatpush.bf16.msrb.mxu2 %v2259_v37  ;;  %366 = vmatpush.bf16.msrb.mxu0 %v2251_v38  ;;  %v2641_v52 = vld [vmem:[#allocation2 + $0x44] sm:$0xf0]  ;;  %v2636_v53 = vld [vmem:[#allocation2 + $0x24] sm:$0xf]  ;;  %v2285_v56 = vor.u32 %v2647_v49, %v2284_v48  ;;  %v2268_v57 = vld [vmem:[#allocation2 + $0x48] sm:$0xf0] }
  0x15   :  { %405 = vmatpush.bf16.msrb.mxu3 %v2263_v33  ;;  %379 = vmatpush.bf16.msrb.mxu1 %v2255_v41  ;;  %v2267_v58 = vor.u32 %v2641_v52, %v2266_v50  ;;  %v2271_v59 = vor.u32 %v2636_v53, %v2268_v57  ;;  %v2007_v61 = vmax.f32 %v138_v6, 1.0  ;;  %v2644_v62 = vld [vmem:[#allocation2 + $0x64] sm:$0xf]  ;;  %v2302_v63 = vld [vmem:[#allocation2 + $0x88] sm:$0xf0]  ;;  %v2010_v6 = vmax.f32 %v141_v11, 1.0 }
  0x16   :  { %v2300_v0 = vld [vmem:[#allocation2 + $0x60] sm:$0xf]  ;;  %v2649_v1 = vld [vmem:[#allocation2 + $0x84] sm:$0xf0]  ;;  %v2292_v4 = vld [vmem:[#allocation2 + $0x58] sm:$0xf]  ;;  %v2305_v7 = vor.u32 %v2644_v62, %v2302_v63 }
  0x17   :  { %v2648_v5 = vld [vmem:[#allocation2 + $0x7c] sm:$0xf0]  ;;  %v2301_v8 = vor.u32 %v2649_v1, %v2300_v0  ;;  %v2646_v18 = vld [vmem:[#allocation2 + $0x74] sm:$0xf]  ;;  %v2318_v19 = vld [vmem:[#allocation2 + $0x98] sm:$0xf0] }
  0x18   :  { %v2316_v2 = vld [vmem:[#allocation2 + $0x70] sm:$0xf]  ;;  %v2308_v20 = vld [vmem:[#allocation2 + $0x68] sm:$0xf]  ;;  %v2645_v22 = vld [vmem:[#allocation2 + $0x6c] sm:$0xf]  ;;  %v2321_v24 = vor.u32 %v2646_v18, %v2318_v19 }
  0x19   :  { %188 = vperm.xlu0 %2720, %v141_v11   ;;  %v2651_v11 = vld [vmem:[#allocation2 + $0x94] sm:$0xf0]  ;;  %v2650_v21 = vld [vmem:[#allocation2 + $0x8c] sm:$0xf0]  ;;  %v2310_v23 = vld [vmem:[#allocation2 + $0x90] sm:$0xf0] }
  0x1a   :  { %v2317_v25 = vor.u32 %v2651_v11, %v2316_v2  ;;  %v2309_v27 = vor.u32 %v2650_v21, %v2308_v20  ;;  %v2313_v28 = vor.u32 %v2645_v22, %v2310_v23  ;;  %v2653_v29 = vld [vmem:[#allocation2 + $0xac] sm:$0xf]  ;;  %v2344_v30 = vld [vmem:[#allocation2 + $0xd0] sm:$0xf0]  ;;  %v2342_v31 = vld [vmem:[#allocation2 + $0xa8] sm:$0xf] }
  0x1b   :  { %193 = vperm.xlu1 %2721, %v142_v12   ;;  %2014 = vperm.xlu2 %2722, %v2004_v60   ;;  %v2643_v12 = vld [vmem:[#allocation2 + $0x5c] sm:$0xf]  ;;  %v2658_v32 = vld [vmem:[#allocation2 + $0xcc] sm:$0xf0]  ;;  %v2334_v33 = vld [vmem:[#allocation2 + $0xa0] sm:$0xf]  ;;  %v2347_v37 = vor.u32 %v2653_v29, %v2344_v30 }
  0x1c   :  { %v2657_v34 = vld [vmem:[#allocation2 + $0xc4] sm:$0xf0]  ;;  %v2652_v35 = vld [vmem:[#allocation2 + $0xa4] sm:$0xf]  ;;  %v2336_v36 = vld [vmem:[#allocation2 + $0xc8] sm:$0xf0]  ;;  %v2343_v38 = vor.u32 %v2658_v32, %v2342_v31 }
  0x1d   :  { %v2335_v39 = vor.u32 %v2657_v34, %v2334_v33  ;;  %v2339_v40 = vor.u32 %v2652_v35, %v2336_v36  ;;  %v2655_v41 = vld [vmem:[#allocation2 + $0xbc] sm:$0xf]  ;;  %v2360_v42 = vld [vmem:[#allocation2 + $0xe0] sm:$0xf0]  ;;  %v2350_v46 = vld [vmem:[#allocation2 + $0xb0] sm:$0xf] }
  0x1e   :  { %v2659_v47 = vld [vmem:[#allocation2 + $0xd4] sm:$0xf0]  ;;  %v2654_v48 = vld [vmem:[#allocation2 + $0xb4] sm:$0xf]  ;;  %v2352_v49 = vld [vmem:[#allocation2 + $0xd8] sm:$0xf0] }
  0x1f   :  { %v2662_v57 = vld [vmem:[#allocation2 + $0xf4] sm:$0xf]  ;;  %v2667_v60 = vld [vmem:[#allocation2 + $0x114] sm:$0xf0]  ;;  %v2661_v63 = vld [vmem:[#allocation2 + $0xe4] sm:$0xf0] }
  0x20   :  { %v2656_v0 = vld [vmem:[#allocation2 + $0xc4] sm:$0xf]  ;;  %v2368_v1 = vld [vmem:[#allocation2 + $0xe8] sm:$0xf0]  ;;  %v2670_v29 = vld [vmem:[#allocation2 + $0x12c] sm:$0xf0] }
  0x21   :  { %2020 = vperm.xlu0 %2720, %v2005_v13   ;;  %v2294_v13 = vld [vmem:[#allocation2 + $0x80] sm:$0xf0]  ;;  %v2665_v30 = vld [vmem:[#allocation2 + $0x10c] sm:$0xf]  ;;  %v2410_v31 = vld [vmem:[#allocation2 + $0x130] sm:$0xf0] }
  0x22   :  { %s2210_s20 = sshll.u32 %s3281_s2, 4  ;;  %s2797_s21 = smov 160   ;;  %s2211_s20 = int_to_ptr.hbm [resolvable:$true] %s2210_s20 }
  0x23   :  { %2026 = vperm.xlu1 %2721, %v2006_v14   ;;  %2032 = vperm.xlu2 %2722, %v2007_v61   ;;  %v2293_v14 = vor.u32 %v2648_v5, %v2292_v4  ;;  %v2366_v61 = vld [vmem:[#allocation2 + $0xc0] sm:$0xf]  ;;  %s2798_s22 = smov 10  }
  0x24   :  { %v2367_v5 = vor.u32 %v2661_v63, %v2366_v61  ;;  %v2460_v63 = vld [vmem:[#allocation2 + $0x180] sm:$0xf0] }
  0x29   :  { %2038 = vperm.xlu0 %2720, %v2008_v15   ;;  %v2297_v15 = vor.u32 %v2643_v12, %v2294_v13  ;;  %v2402_v12 = vld [vmem:[#allocation2 + $0x128] sm:$0xf0]  ;;  %v2400_v13 = vld [vmem:[#allocation2 + $0x100] sm:$0xf] }
  0x2b   :  { %2044 = vperm.xlu1 %2721, %v2009_v16   ;;  %2050 = vperm.xlu2 %2722, %v2010_v6   ;;  %v2663_v6 = vld [vmem:[#allocation2 + $0xfc] sm:$0xf] }
  0x31   :  { %2056 = vperm.xlu0 %2720, %v2011_v17  }
  0x65   :  { %v2911_v22 = vpop.permute.xlu2 %178 }
  0x6d   :  { %v2916_v32 = vpop.permute.xlu2 %183 }
  0x7b   :  { %v159_v44 = vpop.permute.xlu0 %158 }
  0x7c   :  { %v161_v45 = vperm.slane %v159_v44, 0  ;;  %v2358_v44 = vld [vmem:[#allocation2 + $0xb8] sm:$0xf] }
  0x7d   :  { %v169_v50 = vpop.permute.xlu1 %168 }
  0x7e   :  { %vm197_vm2 = vcmp.le.f32.partialorder %v2862_v43, %v161_v45  ;;  %v2660_v45 = vld [vmem:[#allocation2 + $0xdc] sm:$0xf0]  ;;  %v171_v53 = vperm.slane %v169_v50, 0 }
  0x7f   :  { %vm205_vm3 = vmand %vm156_vm1, %vm197_vm2  ;;  %v2359_v52 = vor.u32 %v2660_v45, %v2358_v44  ;;  %v2678_v44 = vld [vmem:[#allocation2 + $0x16c] sm:$0xf0]  ;;  %v2434_v45 = vld [vmem:[#allocation2 + $0x140] sm:$0xf]  ;;  %vm1862_vm2 = vcmask 1040384  }
  0x80   :  { %v2224_v51 = vsel %vm205_vm3, 1.0, %v2795_v10  ;;  %vm199_vm7 = vcmp.le.f32.partialorder %v2862_v43, %v171_v53  ;;  %vm1866_vm3 = vcmask 1041408  }
  0x81   :  { %v229_v54 = vpack.c.bf16 %v2224_v51, %v2224_v51  ;;  %v2363_v51 = vor.u32 %v2655_v41, %v2360_v42  ;;  %vm207_vm8 = vmand %vm156_vm1, %vm199_vm7  ;;  %v2444_v41 = vld [vmem:[#allocation2 + $0x170] sm:$0xf0]  ;;  %v2442_v42 = vld [vmem:[#allocation2 + $0x148] sm:$0xf]  ;;  %vm1872_vm7 = vcmask 1045508  }
  0x83   :  { %2272 = vmatmul.msk.bf16.vlgmr.msra.gmra.mxu0 %vm303_vm4, %v229_v54  ;;  %2273 = vmatmul.msk.bf16.vlgmr.msra.gmra.mxu1 %vm303_vm4, %v229_v54  ;;  %v164_v3 = vpop.permute.xlu0 %163 }
  0x84   :  { %2274 = vmatmul.msk.bf16.vlgmr.msra.gmra.mxu2 %vm303_vm4, %v229_v54  ;;  %2275 = vmatmul.msk.bf16.vlgmr.msra.gmra.mxu3 %vm303_vm4, %v229_v54  ;;  %v166_v16 = vperm.slane %v164_v3, 0 }
  0x85   :  { %510 = vmatpush.bf16.msra.mxu3 %v2289_v55  ;;  %497 = vmatpush.bf16.msra.mxu2 %v2285_v56  ;;  %v2355_v55 = vor.u32 %v2654_v48, %v2352_v49  ;;  %v2226_v56 = vsel %vm207_vm8, 1.0, %v2795_v10  ;;  %v174_v2 = vpop.permute.xlu1 %173  ;;  %v2436_v48 = vld [vmem:[#allocation2 + $0x168] sm:$0xf0] }
  0x86   :  { %418 = vmatpush.bf16.msra.mxu0 %v2267_v58  ;;  %431 = vmatpush.bf16.msra.mxu1 %v2271_v59  ;;  %vm198_vm5 = vcmp.le.f32.partialorder %v2862_v43, %v166_v16  ;;  %v2386_v58 = vld [vmem:[#allocation2 + $0x118] sm:$0xf0]  ;;  %v2384_v59 = vld [vmem:[#allocation2 + $0xf0] sm:$0xf]  ;;  %v231_v62 = vpack.c.bf16 %v2226_v56, %v2226_v56  ;;  %v2668_v16 = vld [vmem:[#allocation2 + $0x11c] sm:$0xf0] }
  0x87   :  { %vm206_vm6 = vmand %vm156_vm1, %vm198_vm5  ;;  %v2389_v3 = vor.u32 %v2662_v57, %v2386_v58  ;;  %v2385_v4 = vor.u32 %v2667_v60, %v2384_v59  ;;  %v176_v21 = vperm.slane %v174_v2, 0  ;;  %vm1868_vm5 = vcmask 1044484  }
  0x88   :  { %v2225_v17 = vsel %vm206_vm6, 1.0, %v2795_v10  ;;  %vm1870_vm6 = vcmask 1046534  }
  0x89   :  { %v230_v26 = vpack.c.bf16 %v2225_v17, %v2225_v17  ;;  %v2394_v17 = vld [vmem:[#allocation2 + $0x120] sm:$0xf0]  ;;  %vm200_vm9 = vcmp.le.f32.partialorder %v2862_v43, %v176_v21 }
  0x8a   :  { %v2397_v20 = vor.u32 %v2663_v6, %v2394_v17  ;;  %vm208_vm10 = vmand %vm156_vm1, %vm200_vm9 }
  0x8b   :  { %v2227_v23 = vsel %vm208_vm10, 1.0, %v2795_v10  ;;  %vm1874_vm10 = vcmask 1043456  }
  0x8c   :  { %v2918_v35 = vpack.c.bf16 %v2227_v23, %v2227_v23 }
  0x93   :  { %2276 = vmatmul.msk.bf16.vlgmr.msrb.gmra.mxu0 %vm303_vm4, %v229_v54  ;;  %2277 = vmatmul.msk.bf16.vlgmr.msrb.gmra.mxu1 %vm303_vm4, %v229_v54 }
  0x94   :  { %2278 = vmatmul.msk.bf16.vlgmr.msrb.gmra.mxu2 %vm303_vm4, %v229_v54  ;;  %2279 = vmatmul.msk.bf16.vlgmr.msrb.gmra.mxu3 %vm303_vm4, %v229_v54 }
  0x95   :  { %562 = vmatpush.bf16.msrb.mxu3 %v2305_v7  ;;  %549 = vmatpush.bf16.msrb.mxu2 %v2301_v8  ;;  %v2371_v7 = vor.u32 %v2656_v0, %v2368_v1  ;;  %v2664_v8 = vld [vmem:[#allocation2 + $0x104] sm:$0xf]  ;;  %v2458_v0 = vld [vmem:[#allocation2 + $0x158] sm:$0xf] }
  0x96   :  { %523 = vmatpush.bf16.msrb.mxu0 %v2293_v14  ;;  %536 = vmatpush.bf16.msrb.mxu1 %v2297_v15  ;;  %v2669_v14 = vld [vmem:[#allocation2 + $0x124] sm:$0xf0]  ;;  %v2392_v15 = vld [vmem:[#allocation2 + $0xf8] sm:$0xf]  ;;  %v2405_v18 = vor.u32 %v2664_v8, %v2402_v12 }
  0x97   :  { %v2401_v19 = vor.u32 %v2669_v14, %v2400_v13  ;;  %v2393_v11 = vor.u32 %v2668_v16, %v2392_v15  ;;  %v2674_v13 = vld [vmem:[#allocation2 + $0x154] sm:$0xf]  ;;  %v2452_v14 = vld [vmem:[#allocation2 + $0x178] sm:$0xf0]  ;;  %v181_v15 = vperm.slane %v2911_v22, 0 }
  0x99   :  { %vm2959_vm13 = vcmp.le.f32.partialorder %v2862_v43, %v181_v15 }
  0x9a   :  { %vm209_vm8 = vmand %vm156_vm1, %vm2959_vm13 }
  0xa3   :  { %2280 = vmatmul.msk.bf16.vlgmr.msra.gmra.mxu0 %vm303_vm4, %v229_v54  ;;  %2281 = vmatmul.msk.bf16.vlgmr.msra.gmra.mxu1 %vm303_vm4, %v229_v54  ;;  %v2351_v54 = vor.u32 %v2659_v47, %v2350_v46  ;;  %v2677_v46 = vld [vmem:[#allocation2 + $0x164] sm:$0xf0]  ;;  %v2672_v47 = vld [vmem:[#allocation2 + $0x144] sm:$0xf] }
  0xa4   :  { %2322 = vmatmul.msk.bf16.vlgmr.msra.gmra.mxu2 %vm303_vm4, %v230_v26  ;;  %2323 = vmatmul.msk.bf16.vlgmr.msra.gmra.mxu3 %vm303_vm4, %v230_v26  ;;  %v2435_v53 = vor.u32 %v2677_v46, %v2434_v45  ;;  %v2228_v45 = vsel %vm209_vm8, 1.0, %v2795_v10 }
  0xa5   :  { %614 = vmatpush.bf16.msra.mxu3 %v2321_v24  ;;  %601 = vmatpush.bf16.msra.mxu2 %v2317_v25  ;;  %v2666_v24 = vld [vmem:[#allocation2 + $0x114] sm:$0xf]  ;;  %v2418_v25 = vld [vmem:[#allocation2 + $0x138] sm:$0xf0] }
  0xa6   :  { %575 = vmatpush.bf16.msra.mxu0 %v2309_v27  ;;  %588 = vmatpush.bf16.msra.mxu1 %v2313_v28  ;;  %v2671_v27 = vld [vmem:[#allocation2 + $0x134] sm:$0xf0]  ;;  %v2408_v28 = vld [vmem:[#allocation2 + $0x108] sm:$0xf]  ;;  %v2421_v33 = vor.u32 %v2666_v24, %v2418_v25  ;;  %v2683_v24 = vld [vmem:[#allocation2 + $0x19c] sm:$0xf] }
  0xa7   :  { %v2409_v36 = vor.u32 %v2670_v29, %v2408_v28 }
  0xb3   :  { %2324 = vmatmul.msk.bf16.vlgmr.msrb.gmra.mxu0 %vm303_vm4, %v230_v26  ;;  %2325 = vmatmul.msk.bf16.vlgmr.msrb.gmra.mxu1 %vm303_vm4, %v230_v26 }
  0xb4   :  { %2326 = vmatmul.msk.bf16.vlgmr.msrb.gmra.mxu2 %vm303_vm4, %v230_v26  ;;  %2327 = vmatmul.msk.bf16.vlgmr.msrb.gmra.mxu3 %vm303_vm4, %v230_v26 }
  0xb5   :  { %719 = vmatpush.bf16.msrb.mxu3 %v2347_v37  ;;  %706 = vmatpush.bf16.msrb.mxu2 %v2343_v38  ;;  %v2413_v37 = vor.u32 %v2665_v30, %v2410_v31  ;;  %v2015_v38 = vpop.permute.xlu2 %2014 }
  0xb6   :  { %680 = vmatpush.bf16.msrb.mxu0 %v2335_v39  ;;  %693 = vmatpush.bf16.msrb.mxu1 %v2339_v40  ;;  %v2926_v39 = vperm.slane %v2015_v38, 0  ;;  %v2673_v40 = vld [vmem:[#allocation2 + $0x14c] sm:$0xf] }
  0xb8   :  { %2723 = vrcp.f32 %v2926_v39  ;;  %vm2065_vm11 = vweird.f32 %v2926_v39  ;;  %v2071_v2 = vand.u32 2147483648, %v2926_v39  ;;  %v2069_v23 = vand.u32 2147483647, %v2926_v39 }
  0xba   :  { %v2072_v28 = vor.u32 1.1754944e-38, %v2071_v2  ;;  %vm2070_vm9 = vcmp.eq.f32.partialorder %v2069_v23, 8.507059e+37  ;;  %v2500_v2 = vld [vmem:[#allocation2 + $0x1a0] sm:$0xf] }
  0xbb   :  { %v2688_v23 = vld [vmem:[#allocation2 + $0x1bc] sm:$0xf0] }
  0xc3   :  { %2328 = vmatmul.msk.bf16.vlgmr.msra.gmra.mxu0 %vm303_vm4, %v230_v26  ;;  %2329 = vmatmul.msk.bf16.vlgmr.msra.gmra.mxu1 %vm303_vm4, %v230_v26 }
  0xc4   :  { %2330 = vmatmul.msk.bf16.vlgmr.msra.gmra.mxu2 %vm303_vm4, %v230_v26  ;;  %2331 = vmatmul.msk.bf16.vlgmr.msra.gmra.mxu3 %vm303_vm4, %v230_v26  ;;  %v2416_v26 = vld [vmem:[#allocation2 + $0x110] sm:$0xf] }
  0xc5   :  { %771 = vmatpush.bf16.msra.mxu3 %v2363_v51  ;;  %758 = vmatpush.bf16.msra.mxu2 %v2359_v52  ;;  %v2417_v34 = vor.u32 %v2671_v27, %v2416_v26  ;;  %v2447_v51 = vor.u32 %v2673_v40, %v2444_v41  ;;  %v2443_v52 = vor.u32 %v2678_v44, %v2442_v42 }
  0xc6   :  { %732 = vmatpush.bf16.msra.mxu0 %v2351_v54  ;;  %745 = vmatpush.bf16.msra.mxu1 %v2355_v55  ;;  %v2439_v54 = vor.u32 %v2672_v47, %v2436_v48  ;;  %v2941_v55 = vpop.eup %2723  ;;  %v2682_v48 = vld [vmem:[#allocation2 + $0x194] sm:$0xf] }
  0xc7   :  { %v2061_v60 = vmul.f32 %v2941_v55, %v2926_v39  ;;  %vm2066_vm12 = vweird.f32 %v2941_v55 }
  0xc8   :  { %vm2967_vm15 = vmor %vm2065_vm11, %vm2066_vm12 }
  0xc9   :  { %v2062_v61 = vsub.f32 1.0, %v2061_v60 }
  0xcb   :  { %v2063_v16 = vmul.f32 %v2941_v55, %v2062_v61 }
  0xcd   :  { %v2064_v22 = vadd.f32 %v2941_v55, %v2063_v16 }
  0xcf   :  { %v2068_v38 = vsel %vm2967_vm15, %v2941_v55, %v2064_v22 }
  0xd0   :  { %v2073_v46 = vsel %vm2070_vm9, %v2072_v28, %v2068_v38 }
  0xd3   :  { %2372 = vmatmul.msk.bf16.vlgmr.msrb.gmra.mxu0 %vm303_vm4, %v231_v62  ;;  %2373 = vmatmul.msk.bf16.vlgmr.msrb.gmra.mxu1 %vm303_vm4, %v231_v62 }
  0xd4   :  { %2374 = vmatmul.msk.bf16.vlgmr.msrb.gmra.mxu2 %vm303_vm4, %v231_v62  ;;  %2375 = vmatmul.msk.bf16.vlgmr.msrb.gmra.mxu3 %vm303_vm4, %v231_v62 }
  0xd5   :  { %876 = vmatpush.bf16.msrb.mxu3 %v2389_v3  ;;  %863 = vmatpush.bf16.msrb.mxu2 %v2385_v4  ;;  %v2680_v4 = vld [vmem:[#allocation2 + $0x17c] sm:$0xf0] }
  0xd6   :  { %784 = vmatpush.bf16.msrb.mxu0 %v2367_v5  ;;  %797 = vmatpush.bf16.msrb.mxu1 %v2371_v7  ;;  %v2450_v5 = vld [vmem:[#allocation2 + $0x150] sm:$0xf]  ;;  %v2679_v7 = vld [vmem:[#allocation2 + $0x174] sm:$0xf0]  ;;  %v2459_v17 = vor.u32 %v2680_v4, %v2458_v0 }
  0xe3   :  { %2376 = vmatmul.msk.bf16.vlgmr.msra.gmra.mxu0 %vm303_vm4, %v231_v62  ;;  %2377 = vmatmul.msk.bf16.vlgmr.msra.gmra.mxu1 %vm303_vm4, %v231_v62 }
  0xe4   :  { %2378 = vmatmul.msk.bf16.vlgmr.msra.gmra.mxu2 %vm303_vm4, %v231_v62  ;;  %2379 = vmatmul.msk.bf16.vlgmr.msra.gmra.mxu3 %vm303_vm4, %v231_v62 }
  0xe5   :  { %928 = vmatpush.bf16.msra.mxu3 %v2405_v18  ;;  %915 = vmatpush.bf16.msra.mxu2 %v2401_v19  ;;  %v2451_v18 = vor.u32 %v2679_v7, %v2450_v5  ;;  %v2455_v19 = vor.u32 %v2674_v13, %v2452_v14 }
  0xe6   :  { %889 = vmatpush.bf16.msra.mxu0 %v2393_v11  ;;  %902 = vmatpush.bf16.msra.mxu1 %v2397_v20 }
  0xf3   :  { %2380 = vmatmul.msk.bf16.vlgmr.msrb.gmra.mxu0 %vm303_vm4, %v231_v62  ;;  %2381 = vmatmul.msk.bf16.vlgmr.msrb.gmra.mxu1 %vm303_vm4, %v231_v62  ;;  %v2675_v62 = vld [vmem:[#allocation2 + $0x15c] sm:$0xf] }
  0xf4   :  { %2422 = vmatmul.msk.bf16.vlgmr.msrb.gmra.mxu2 %vm303_vm4, %v2918_v35  ;;  %2423 = vmatmul.msk.bf16.vlgmr.msrb.gmra.mxu3 %vm303_vm4, %v2918_v35  ;;  %v2463_v6 = vor.u32 %v2675_v62, %v2460_v63  ;;  %v238_v62 = vld [vmem:[#allocation5 + $0x8] sm:$0x3] }
  0xf5   :  { %980 = vmatpush.bf16.msrb.mxu3 %v2421_v33  ;;  %967 = vmatpush.bf16.msrb.mxu2 %v2417_v34 }
  0xf6   :  { %941 = vmatpush.bf16.msrb.mxu0 %v2409_v36  ;;  %954 = vmatpush.bf16.msrb.mxu1 %v2413_v37  ;;  %v2973_v37 = vpop.permute.xlu0 %188 }
  0xfe   :  { %v2021_v5 = vpop.permute.xlu0 %2020 }
 0x100   :  { %v2929_v49 = vpop.f32.mrf.mxu0  ;;  %v2931_v50 = vpop.f32.mrf.mxu1 }
 0x101   :  { %v1798_v25 = vrot.slane %v2931_v50, 7  ;;  %v2486_v50 = vld [vmem:[#allocation2 + $0x1b8] sm:$0xf0] }
 0x102   :  { %v2489_v0 = vor.u32 %v2682_v48, %v2486_v50  ;;  %v2518_v48 = vld [vmem:[#allocation2 + $0x1d8] sm:$0xf0]  ;;  %v2516_v50 = vld [vmem:[#allocation2 + $0x1b0] sm:$0xf] }
 0x103   :  { %2424 = vmatmul.msk.bf16.vlgmr.msra.gmra.mxu0 %vm303_vm4, %v2918_v35  ;;  %2425 = vmatmul.msk.bf16.vlgmr.msra.gmra.mxu1 %vm303_vm4, %v2918_v35  ;;  %v1863_v39 = vsel %vm1862_vm2, %v2929_v49, %v1798_v25  ;;  %v2494_v25 = vld [vmem:[#allocation2 + $0x1c0] sm:$0xf0] }
 0x104   :  { %2426 = vmatmul.msk.bf16.vlgmr.msra.gmra.mxu2 %vm303_vm4, %v2918_v35  ;;  %2427 = vmatmul.msk.bf16.vlgmr.msra.gmra.mxu3 %vm303_vm4, %v2918_v35 }
 0x105   :  { %1085 = vmatpush.bf16.msra.mxu3 %v2447_v51  ;;  %1072 = vmatpush.bf16.msra.mxu2 %v2443_v52  ;;  %v2484_v51 = vld [vmem:[#allocation2 + $0x190] sm:$0xf]  ;;  %v2687_v52 = vld [vmem:[#allocation2 + $0x1b4] sm:$0xf0] }
 0x106   :  { %1046 = vmatpush.bf16.msra.mxu0 %v2435_v53  ;;  %1059 = vmatpush.bf16.msra.mxu1 %v2439_v54  ;;  %v2466_v53 = vld [vmem:[#allocation2 + $0x160] sm:$0xf]  ;;  %v2990_v54 = vpack.c.bf16 %v2228_v45, %v2228_v45 }
 0x107   :  { %v342_v56 = vpop.f32.mrf.mxu2  ;;  %v355_v57 = vpop.f32.mrf.mxu3 }
 0x108   :  { %v318_v58 = vpop.f32.mrf.mxu0  ;;  %v331_v59 = vpop.f32.mrf.mxu1  ;;  %v1799_v11 = vrot.slane %v342_v56, 6  ;;  %v1800_v20 = vrot.slane %v355_v57, 5  ;;  %v2681_v57 = vld [vmem:[#allocation2 + $0x184] sm:$0xf0] }
 0x109   :  { %v2676_v58 = vld [vmem:[#allocation2 + $0x164] sm:$0xf]  ;;  %v2468_v59 = vld [vmem:[#allocation2 + $0x188] sm:$0xf0] }
 0x10a   :  { %v1865_v31 = vsel %vm1864_vm14, %v1799_v11, %v1800_v20  ;;  %v2471_v4 = vor.u32 %v2676_v58, %v2468_v59  ;;  %v2689_v11 = vld [vmem:[#allocation2 + $0x1c4] sm:$0xf0]  ;;  %v2492_v20 = vld [vmem:[#allocation2 + $0x198] sm:$0xf]  ;;  %v2685_v58 = vld [vmem:[#allocation2 + $0x1ac] sm:$0xf] }
 0x10b   :  { %v1867_v42 = vsel %vm1866_vm3, %v1863_v39, %v1865_v31  ;;  %v186_v31 = vperm.slane %v2916_v32, 0  ;;  %v2510_v59 = vld [vmem:[#allocation2 + $0x1d0] sm:$0xf0] }
 0x10d   :  { %vm202_vm11 = vcmp.le.f32.partialorder %v2862_v43, %v186_v31 }
 0x10e   :  { %vm210_vm12 = vmand %vm156_vm1, %vm202_vm11 }
 0x10f   :  { %v344_v1 = vpop.f32.mrf.mxu2  ;;  %v357_v3 = vpop.f32.mrf.mxu3 }
 0x110   :  { %v368_v8 = vpop.f32.mrf.mxu0  ;;  %v381_v12 = vpop.f32.mrf.mxu1  ;;  %v2485_v1 = vor.u32 %v2687_v52, %v2484_v51  ;;  %v2467_v3 = vor.u32 %v2681_v57, %v2466_v53  ;;  %v2691_v53 = vld [vmem:[#allocation2 + $0x1d4] sm:$0xf0]  ;;  %v2690_v57 = vld [vmem:[#allocation2 + $0x1cc] sm:$0xf0] }
 0x111   :  { %v1801_v26 = vrot.slane %v368_v8, 4  ;;  %v1802_v27 = vrot.slane %v381_v12, 3  ;;  %v3001_v12 = vperm.slane %v2021_v5, 0 }
 0x113   :  { %2428 = vmatmul.msk.bf16.vlgmr.msrb.gmra.mxu0 %vm303_vm4, %v2918_v35  ;;  %2429 = vmatmul.msk.bf16.vlgmr.msrb.gmra.mxu1 %vm303_vm4, %v2918_v35  ;;  %v1869_v40 = vsel %vm1868_vm5, %v1801_v26, %v1802_v27  ;;  %2725 = vrcp.f32 %v3001_v12  ;;  %vm2081_vm13 = vweird.f32 %v3001_v12 }
 0x114   :  { %2430 = vmatmul.msk.bf16.vlgmr.msrb.gmra.mxu2 %vm303_vm4, %v2918_v35  ;;  %2431 = vmatmul.msk.bf16.vlgmr.msrb.gmra.mxu3 %vm303_vm4, %v2918_v35 }
 0x115   :  { %1137 = vmatpush.bf16.msrb.mxu3 %v2463_v6  ;;  %1124 = vmatpush.bf16.msrb.mxu2 %v2459_v17  ;;  %v2684_v17 = vld [vmem:[#allocation2 + $0x1a4] sm:$0xf] }
 0x116   :  { %1098 = vmatpush.bf16.msrb.mxu0 %v2451_v18  ;;  %1111 = vmatpush.bf16.msrb.mxu1 %v2455_v19  ;;  %v2502_v18 = vld [vmem:[#allocation2 + $0x1c8] sm:$0xf0] }
 0x117   :  { %v394_v29 = vpop.f32.mrf.mxu2  ;;  %v407_v30 = vpop.f32.mrf.mxu3 }
 0x118   :  { %v1803_v33 = vrot.slane %v394_v29, 2  ;;  %v1804_v34 = vrot.slane %v407_v30, 1  ;;  %v370_v35 = vpop.f32.mrf.mxu0  ;;  %v383_v36 = vpop.f32.mrf.mxu1  ;;  %v2505_v29 = vor.u32 %v2684_v17, %v2502_v18  ;;  %v2501_v30 = vor.u32 %v2689_v11, %v2500_v2 }
 0x119   :  { %v3010_v26 = vpop.eup %2725 }
 0x11a   :  { %v1871_v41 = vsel %vm1870_vm6, %v1803_v33, %v1804_v34  ;;  %v2493_v33 = vor.u32 %v2688_v23, %v2492_v20  ;;  %v2497_v34 = vor.u32 %v2683_v24, %v2494_v25  ;;  %v2077_v35 = vmul.f32 %v3010_v26, %v3001_v12  ;;  %v240_v24 = vld [vmem:[#allocation5 + $0x12] sm:$0x3] }
 0x11b   :  { %v1873_v44 = vsel %vm1872_vm7, %v1869_v40, %v1871_v41  ;;  %vm2082_vm15 = vweird.f32 %v3010_v26 }
 0x11c   :  { %v1875_v47 = vsel %vm1874_vm10, %v1867_v42, %v1873_v44  ;;  %v2078_v32 = vsub.f32 1.0, %v2077_v35  ;;  %v2229_v42 = vsel %vm210_vm12, 1.0, %v2795_v10  ;;  %vm3043_vm8 = vmor %vm2081_vm13, %vm2082_vm15  ;;  %v2542_v35 = vld [vmem:[#allocation2 + $0x1e8] sm:$0xf] }
 0x11d   :  { %v2074_v49 = vmul.f32 %v2073_v46, %v1875_v47  ;;  %v2686_v47 = vld [vmem:[#allocation2 + $0x1b4] sm:$0xf] }
 0x11e   :  { %v2079_v41 = vmul.f32 %v3010_v26, %v2078_v32  ;;  %v2521_v5 = vor.u32 %v2686_v47, %v2518_v48  ;;  %v2698_v32 = vld [vmem:[#allocation2 + $0x20c] sm:$0xf0] }
 0x11f   :  { %v396_v55 = vpop.f32.mrf.mxu2  ;;  %v409_v56 = vpop.f32.mrf.mxu3  ;;  %2188 = vst [vmem:[#allocation5] sm:$0xff] %v2074_v49  ;;  %v2508_v49 = vld [vmem:[#allocation2 + $0x1a8] sm:$0xf]  ;;  %v2543_v47 = vor.u32 %v2698_v32, %v2542_v35 }
 0x120   :  { %v420_v60 = vpop.f32.mrf.mxu0  ;;  %v433_v61 = vpop.f32.mrf.mxu1 }
 0x121   :  { %v1805_v63 = vrot.slane %v433_v61, 7  ;;  %v2087_v61 = vand.u32 2147483648, %v3001_v12 }
 0x123   :  { %v1876_v7 = vsel %vm1862_vm2, %v420_v60, %v1805_v63  ;;  %2472 = vmatmul.msk.bf16.vlgmr.msra.gmra.mxu0 %vm303_vm4, %v2990_v54  ;;  %2473 = vmatmul.msk.bf16.vlgmr.msra.gmra.mxu1 %vm303_vm4, %v2990_v54  ;;  %v2080_v60 = vadd.f32 %v3010_v26, %v2079_v41  ;;  %v2692_v41 = vld [vmem:[#allocation2 + $0x1e4] sm:$0xf] }
 0x124   :  { %v1950_v8 = vadd.f32 %v1876_v7, %v238_v62  ;;  %2474 = vmatmul.msk.bf16.vlgmr.msra.gmra.mxu2 %vm303_vm4, %v2990_v54  ;;  %2475 = vmatmul.msk.bf16.vlgmr.msra.gmra.mxu3 %vm303_vm4, %v2990_v54  ;;  %v2517_v7 = vor.u32 %v2691_v53, %v2516_v50 }
 0x125   :  { %1242 = vmatpush.bf16.msra.mxu3 %v2489_v0  ;;  %1229 = vmatpush.bf16.msra.mxu2 %v2485_v1  ;;  %v3036_v1 = vpop.permute.xlu1 %193 }
 0x126   :  { %1970 = vst.msk [vmem:[#allocation5 + $0x8] sm:$0x3] %vm2830_vm0, %v1950_v8  ;;  %1150 = vmatpush.bf16.msra.mxu0 %v2467_v3  ;;  %1163 = vmatpush.bf16.msra.mxu1 %v2471_v4  ;;  %v2085_v8 = vand.u32 2147483647, %v3001_v12  ;;  %v2084_v12 = vsel %vm3043_vm8, %v3010_v26, %v2080_v60  ;;  %v2695_v60 = vld [vmem:[#allocation2 + $0x1fc] sm:$0xf] }
 0x127   :  { %v3005_v13 = vpop.f32.mrf.mxu2  ;;  %v3007_v14 = vpop.f32.mrf.mxu3 }
 0x128   :  { %v422_v15 = vpop.f32.mrf.mxu0  ;;  %v435_v16 = vpop.f32.mrf.mxu1  ;;  %v1806_v44 = vrot.slane %v3007_v14, 7  ;;  %v3039_v14 = vpack.c.bf16 %v2229_v42, %v2229_v42  ;;  %vm2086_vm9 = vcmp.eq.f32.partialorder %v2085_v8, 8.507059e+37  ;;  %v2536_v42 = vld [vmem:[#allocation2 + $0x208] sm:$0xf0] }
 0x129   :  { %v2509_v15 = vor.u32 %v2690_v57, %v2508_v49  ;;  %v2513_v16 = vor.u32 %v2685_v58, %v2510_v59  ;;  %v2539_v50 = vor.u32 %v2692_v41, %v2536_v42  ;;  %v2702_v41 = vld [vmem:[#allocation2 + $0x234] sm:$0xf]  ;;  %v2586_v42 = vld [vmem:[#allocation2 + $0x258] sm:$0xf0] }
 0x12a   :  { %v1877_v17 = vsel %vm1862_vm2, %v3005_v13, %v1806_v44  ;;  %v2088_v13 = vor.u32 1.1754944e-38, %v2087_v61  ;;  %v2560_v61 = vld [vmem:[#allocation2 + $0x220] sm:$0xf0] }
 0x12d   :  { %v1989_v6 = vld [vmem:[#allocation5 + $0x8] sm:$0x3] }
 0x12e   :  { %v2075_v19 = vmul.f32 %v2073_v46, %v1989_v6  ;;  %v2563_v6 = vor.u32 %v2695_v60, %v2560_v61  ;;  %v2589_v60 = vor.u32 %v2702_v41, %v2586_v42  ;;  %v2706_v41 = vld [vmem:[#allocation2 + $0x254] sm:$0xf]  ;;  %v2618_v42 = vld [vmem:[#allocation2 + $0x278] sm:$0xf0] }
 0x12f   :  { %v501_v21 = vpop.f32.mrf.mxu2  ;;  %v514_v22 = vpop.f32.mrf.mxu3 }
 0x130   :  { %2189 = vst.msk [vmem:[#allocation5 + $0x8] sm:$0x3] %vm2830_vm0, %v2075_v19  ;;  %v525_v27 = vpop.f32.mrf.mxu0  ;;  %v538_v28 = vpop.f32.mrf.mxu1 }
 0x131   :  { %v1807_v45 = vrot.slane %v525_v27, 6  ;;  %v1808_v46 = vrot.slane %v538_v28, 5 }
 0x133   :  { %2476 = vmatmul.msk.bf16.vlgmr.msrb.gmra.mxu0 %vm303_vm4, %v2990_v54  ;;  %2477 = vmatmul.msk.bf16.vlgmr.msrb.gmra.mxu1 %vm303_vm4, %v2990_v54  ;;  %v1878_v62 = vsel %vm1864_vm14, %v1807_v45, %v1808_v46 }
 0x134   :  { %2478 = vmatmul.msk.bf16.vlgmr.msrb.gmra.mxu2 %vm303_vm4, %v2990_v54  ;;  %2479 = vmatmul.msk.bf16.vlgmr.msrb.gmra.mxu3 %vm303_vm4, %v2990_v54  ;;  %v1879_v2 = vsel %vm1866_vm3, %v1877_v17, %v1878_v62  ;;  %v2558_v62 = vld [vmem:[#allocation2 + $0x1f8] sm:$0xf] }
 0x135   :  { %1294 = vmatpush.bf16.msrb.mxu3 %v2505_v29  ;;  %1281 = vmatpush.bf16.msrb.mxu2 %v2501_v30  ;;  %v2027_v29 = vpop.permute.xlu1 %2026 }
 0x136   :  { %1255 = vmatpush.bf16.msrb.mxu0 %v2493_v33  ;;  %1268 = vmatpush.bf16.msrb.mxu1 %v2497_v34  ;;  %v3066_v31 = vperm.slane %v2027_v29, 0  ;;  %v2693_v33 = vld [vmem:[#allocation2 + $0x1ec] sm:$0xf]  ;;  %v2544_v34 = vld [vmem:[#allocation2 + $0x210] sm:$0xf0] }
 0x137   :  { %v551_v36 = vpop.f32.mrf.mxu2  ;;  %v564_v38 = vpop.f32.mrf.mxu3  ;;  %v2547_v46 = vor.u32 %v2693_v33, %v2544_v34 }
 0x138   :  { %v527_v39 = vpop.f32.mrf.mxu0  ;;  %v540_v40 = vpop.f32.mrf.mxu1  ;;  %v1809_v51 = vrot.slane %v551_v36, 4  ;;  %v1810_v52 = vrot.slane %v564_v38, 3  ;;  %v2534_v36 = vld [vmem:[#allocation2 + $0x1e0] sm:$0xf]  ;;  %2727 = vrcp.f32 %v3066_v31  ;;  %vm2097_vm11 = vweird.f32 %v3066_v31 }
 0x139   :  { %v2697_v40 = vld [vmem:[#allocation2 + $0x204] sm:$0xf0] }
 0x13a   :  { %v1880_v18 = vsel %vm1868_vm5, %v1809_v51, %v1810_v52  ;;  %v2535_v48 = vor.u32 %v2697_v40, %v2534_v36 }
 0x13e   :  { %v3083_v53 = vpop.eup %2727 }
 0x13f   :  { %v553_v55 = vpop.f32.mrf.mxu2  ;;  %v566_v56 = vpop.f32.mrf.mxu3  ;;  %v2093_v58 = vmul.f32 %v3083_v53, %v3066_v31  ;;  %vm2098_vm12 = vweird.f32 %v3083_v53 }
 0x140   :  { %v577_v63 = vpop.f32.mrf.mxu0  ;;  %v590_v0 = vpop.f32.mrf.mxu1  ;;  %vm3108_vm15 = vmor %vm2097_vm11, %vm2098_vm12 }
 0x141   :  { %v1811_v3 = vrot.slane %v577_v63, 2  ;;  %v1812_v4 = vrot.slane %v590_v0, 1  ;;  %v2094_v59 = vsub.f32 1.0, %v2093_v58  ;;  %v242_v58 = vld [vmem:[#allocation5 + $0x1c] sm:$0x3] }
 0x143   :  { %v1881_v19 = vsel %vm1870_vm6, %v1811_v3, %v1812_v4  ;;  %2480 = vmatmul.msk.bf16.vlgmr.msra.gmra.mxu0 %vm303_vm4, %v2990_v54  ;;  %2481 = vmatmul.msk.bf16.vlgmr.msra.gmra.mxu1 %vm303_vm4, %v2990_v54  ;;  %v2089_v54 = vsel %vm2086_vm9, %v2088_v13, %v2084_v12  ;;  %v2700_v3 = vld [vmem:[#allocation2 + $0x21c] sm:$0xf0]  ;;  %v2550_v4 = vld [vmem:[#allocation2 + $0x1f0] sm:$0xf]  ;;  %v191_v12 = vperm.slane %v2973_v37, 0  ;;  %v2103_v37 = vand.u32 2147483648, %v3066_v31 }
 0x144   :  { %v1882_v11 = vsel %vm1872_vm7, %v1880_v18, %v1881_v19  ;;  %2522 = vmatmul.msk.bf16.vlgmr.msra.gmra.mxu2 %vm303_vm4, %v3039_v14  ;;  %2523 = vmatmul.msk.bf16.vlgmr.msra.gmra.mxu3 %vm303_vm4, %v3039_v14  ;;  %v2559_v17 = vor.u32 %v2700_v3, %v2558_v62 }
 0x145   :  { %v1883_v20 = vsel %vm1874_vm10, %v1879_v2, %v1882_v11  ;;  %1346 = vmatpush.bf16.msra.mxu3 %v2521_v5  ;;  %1333 = vmatpush.bf16.msra.mxu2 %v2517_v7  ;;  %v2699_v5 = vld [vmem:[#allocation2 + $0x214] sm:$0xf0]  ;;  %v2095_v2 = vmul.f32 %v3083_v53, %v2094_v59  ;;  %vm203_vm13 = vcmp.le.f32.partialorder %v2862_v43, %v191_v12  ;;  %v2104_v33 = vor.u32 1.1754944e-38, %v2103_v37  ;;  %v2600_v12 = vld [vmem:[#allocation2 + $0x240] sm:$0xf] }
 0x146   :  { %1307 = vmatpush.bf16.msra.mxu0 %v2509_v15  ;;  %1320 = vmatpush.bf16.msra.mxu1 %v2513_v16  ;;  %v2090_v23 = vmul.f32 %v2089_v54, %v1883_v20  ;;  %v2694_v15 = vld [vmem:[#allocation2 + $0x1f4] sm:$0xf]  ;;  %v2552_v16 = vld [vmem:[#allocation2 + $0x218] sm:$0xf0]  ;;  %v2551_v18 = vor.u32 %v2699_v5, %v2550_v4  ;;  %vm211_vm8 = vmand %vm156_vm1, %vm203_vm13  ;;  %v2033_v4 = vpop.permute.xlu2 %2032 }
 0x147   :  { %v603_v21 = vpop.f32.mrf.mxu2  ;;  %v616_v22 = vpop.f32.mrf.mxu3  ;;  %v2555_v19 = vor.u32 %v2694_v15, %v2552_v16  ;;  %v2230_v40 = vsel %vm211_vm8, 1.0, %v2795_v10  ;;  %v3139_v5 = vperm.slane %v2033_v4, 0 }
 0x148   :  { %v1813_v25 = vrot.slane %v616_v22, 7  ;;  %v579_v26 = vpop.f32.mrf.mxu0  ;;  %v592_v27 = vpop.f32.mrf.mxu1  ;;  %2190 = vst [vmem:[#allocation5 + $0xa] sm:$0xff] %v2090_v23  ;;  %v2096_v22 = vadd.f32 %v3083_v53, %v2095_v2  ;;  %v2709_v2 = vld [vmem:[#allocation2 + $0x264] sm:$0xf0] }
 0x149   :  { %2729 = vrcp.f32 %v3139_v5  ;;  %vm2113_vm13 = vweird.f32 %v3139_v5 }
 0x14a   :  { %v1884_v28 = vsel %vm1862_vm2, %v603_v21, %v1813_v25  ;;  %v2100_v32 = vsel %vm3108_vm15, %v3083_v53, %v2096_v22  ;;  %v2696_v53 = vld [vmem:[#allocation2 + $0x204] sm:$0xf] }
 0x14b   :  { %v1952_v30 = vadd.f32 %v1884_v28, %v240_v24 }
 0x14d   :  { %1972 = vst.msk [vmem:[#allocation5 + $0x12] sm:$0x3] %vm2830_vm0, %v1952_v30 }
 0x14f   :  { %v605_v38 = vpop.f32.mrf.mxu2  ;;  %v618_v39 = vpop.f32.mrf.mxu3 }
 0x150   :  { %v3071_v44 = vpop.f32.mrf.mxu0  ;;  %v3073_v45 = vpop.f32.mrf.mxu1 }
 0x151   :  { %v1814_v20 = vrot.slane %v3073_v45, 7  ;;  %v2584_v45 = vld [vmem:[#allocation2 + $0x230] sm:$0xf] }
 0x153   :  { %2524 = vmatmul.msk.bf16.vlgmr.msrb.gmra.mxu0 %vm303_vm4, %v3039_v14  ;;  %2525 = vmatmul.msk.bf16.vlgmr.msrb.gmra.mxu1 %vm303_vm4, %v3039_v14  ;;  %v1885_v34 = vsel %vm1862_vm2, %v3071_v44, %v1814_v20  ;;  %v2708_v20 = vld [vmem:[#allocation2 + $0x25c] sm:$0xf0] }
 0x154   :  { %v1991_v51 = vld [vmem:[#allocation5 + $0x12] sm:$0x3]  ;;  %2526 = vmatmul.msk.bf16.vlgmr.msrb.gmra.mxu2 %vm303_vm4, %v3039_v14  ;;  %2527 = vmatmul.msk.bf16.vlgmr.msrb.gmra.mxu3 %vm303_vm4, %v3039_v14 }
 0x155   :  { %v2091_v52 = vmul.f32 %v2089_v54, %v1991_v51  ;;  %1451 = vmatpush.bf16.msrb.mxu3 %v2547_v46  ;;  %1438 = vmatpush.bf16.msrb.mxu2 %v2543_v47  ;;  %v2707_v46 = vld [vmem:[#allocation2 + $0x254] sm:$0xf0]  ;;  %v2566_v47 = vld [vmem:[#allocation2 + $0x200] sm:$0xf] }
 0x156   :  { %1412 = vmatpush.bf16.msrb.mxu0 %v2535_v48  ;;  %1425 = vmatpush.bf16.msrb.mxu1 %v2539_v50  ;;  %v2585_v61 = vor.u32 %v2707_v46, %v2584_v45  ;;  %v2711_v46 = vld [vmem:[#allocation2 + $0x274] sm:$0xf0] }
 0x157   :  { %2191 = vst.msk [vmem:[#allocation5 + $0x12] sm:$0x3] %vm2830_vm0, %v2091_v52  ;;  %v708_v49 = vpop.f32.mrf.mxu2  ;;  %v721_v55 = vpop.f32.mrf.mxu3  ;;  %v2701_v52 = vld [vmem:[#allocation2 + $0x224] sm:$0xf0] }
 0x158   :  { %v684_v56 = vpop.f32.mrf.mxu0  ;;  %v697_v57 = vpop.f32.mrf.mxu1  ;;  %v1815_v11 = vrot.slane %v708_v49, 6  ;;  %v1816_v13 = vrot.slane %v721_v55, 5  ;;  %v2568_v49 = vld [vmem:[#allocation2 + $0x228] sm:$0xf0]  ;;  %v2567_v62 = vor.u32 %v2701_v52, %v2566_v47  ;;  %v2608_v47 = vld [vmem:[#allocation2 + $0x248] sm:$0xf] }
 0x159   :  { %v3126_v57 = vpack.c.bf16 %v2230_v40, %v2230_v40  ;;  %v2610_v52 = vld [vmem:[#allocation2 + $0x270] sm:$0xf0] }
 0x15a   :  { %v1886_v26 = vsel %vm1864_vm14, %v1815_v11, %v1816_v13  ;;  %v2592_v11 = vld [vmem:[#allocation2 + $0x238] sm:$0xf] }
 0x15b   :  { %v1887_v36 = vsel %vm1866_vm3, %v1885_v34, %v1886_v26  ;;  %v2601_v26 = vor.u32 %v2709_v2, %v2600_v12 }
 0x15f   :  { %v710_v63 = vpop.f32.mrf.mxu2  ;;  %v723_v0 = vpop.f32.mrf.mxu3 }
 0x160   :  { %v734_v7 = vpop.f32.mrf.mxu0  ;;  %v747_v8 = vpop.f32.mrf.mxu1  ;;  %v2571_v63 = vor.u32 %v2696_v53, %v2568_v49  ;;  %v2117_v49 = vand.u32 2147483647, %v3139_v5 }
 0x161   :  { %v1817_v54 = vrot.slane %v734_v7, 4  ;;  %v1818_v21 = vrot.slane %v747_v8, 3 }
 0x162   :  { %vm2118_vm8 = vcmp.eq.f32.partialorder %v2117_v49, 8.507059e+37 }
 0x163   :  { %2528 = vmatmul.msk.bf16.vlgmr.msra.gmra.mxu0 %vm303_vm4, %v3039_v14  ;;  %2529 = vmatmul.msk.bf16.vlgmr.msra.gmra.mxu1 %vm303_vm4, %v3039_v14  ;;  %v1888_v35 = vsel %vm1868_vm5, %v1817_v54, %v1818_v21  ;;  %v2703_v54 = vld [vmem:[#allocation2 + $0x23c] sm:$0xf]  ;;  %v2594_v21 = vld [vmem:[#allocation2 + $0x260] sm:$0xf0] }
 0x164   :  { %2530 = vmatmul.msk.bf16.vlgmr.msra.gmra.mxu2 %vm303_vm4, %v3039_v14  ;;  %2531 = vmatmul.msk.bf16.vlgmr.msra.gmra.mxu3 %vm303_vm4, %v3039_v14  ;;  %v2101_v14 = vand.u32 2147483647, %v3066_v31 }
 0x165   :  { %1503 = vmatpush.bf16.msra.mxu3 %v2563_v6  ;;  %1490 = vmatpush.bf16.msra.mxu2 %v2559_v17  ;;  %v2704_v17 = vld [vmem:[#allocation2 + $0x244] sm:$0xf] }
 0x166   :  { %1464 = vmatpush.bf16.msra.mxu0 %v2551_v18  ;;  %1477 = vmatpush.bf16.msra.mxu1 %v2555_v19  ;;  %vm2102_vm9 = vcmp.eq.f32.partialorder %v2101_v14, 8.507059e+37  ;;  %v2602_v18 = vld [vmem:[#allocation2 + $0x268] sm:$0xf0] }
 0x167   :  { %v760_v23 = vpop.f32.mrf.mxu2  ;;  %v773_v24 = vpop.f32.mrf.mxu3  ;;  %v2105_v44 = vsel %vm2102_vm9, %v2104_v33, %v2100_v32  ;;  %v2605_v25 = vor.u32 %v2704_v17, %v2602_v18  ;;  %v2119_v32 = vand.u32 2147483648, %v3139_v5 }
 0x168   :  { %v1819_v27 = vrot.slane %v760_v23, 2  ;;  %v1820_v28 = vrot.slane %v773_v24, 1  ;;  %v736_v29 = vpop.f32.mrf.mxu0  ;;  %v749_v30 = vpop.f32.mrf.mxu1  ;;  %v196_v24 = vperm.slane %v3036_v1, 0 }
 0x169   :  { %v3148_v23 = vpop.eup %2729 }
 0x16a   :  { %v1889_v31 = vsel %vm1870_vm6, %v1819_v27, %v1820_v28  ;;  %v2593_v27 = vor.u32 %v2708_v20, %v2592_v11  ;;  %v2597_v28 = vor.u32 %v2703_v54, %v2594_v21  ;;  %v2109_v29 = vmul.f32 %v3148_v23, %v3139_v5  ;;  %v244_v11 = vld [vmem:[#allocation5 + $0x26] sm:$0x3]  ;;  %v2039_v21 = vpop.permute.xlu0 %2038 }
 0x16b   :  { %v1890_v38 = vsel %vm1872_vm7, %v1888_v35, %v1889_v31  ;;  %vm204_vm11 = vcmp.le.f32.partialorder %v2862_v43, %v196_v24 }
 0x16c   :  { %v1891_v39 = vsel %vm1874_vm10, %v1887_v36, %v1890_v38  ;;  %vm212_vm12 = vmand %vm156_vm1, %vm204_vm11  ;;  %v2110_v33 = vsub.f32 1.0, %v2109_v29  ;;  %vm2114_vm1 = vweird.f32 %v3148_v23 }
 0x16d   :  { %v2106_v48 = vmul.f32 %v2105_v44, %v1891_v39  ;;  %v2231_v31 = vsel %vm212_vm12, 1.0, %v2795_v10  ;;  %vm3177_vm15 = vmor %vm2113_vm13, %vm2114_vm1 }
 0x16e   :  { %v2111_v36 = vmul.f32 %v3148_v23, %v2110_v33 }
 0x16f   :  { %v762_v50 = vpop.f32.mrf.mxu2  ;;  %v775_v51 = vpop.f32.mrf.mxu3  ;;  %2192 = vst [vmem:[#allocation5 + $0x14] sm:$0xff] %v2106_v48 }
 0x170   :  { %v786_v55 = vpop.f32.mrf.mxu0  ;;  %v799_v56 = vpop.f32.mrf.mxu1  ;;  %v2710_v50 = vld [vmem:[#allocation2 + $0x26c] sm:$0xf0]  ;;  %v2705_v51 = vld [vmem:[#allocation2 + $0x24c] sm:$0xf]  ;;  %v2112_v53 = vadd.f32 %v3148_v23, %v2111_v36 }
 0x171   :  { %v1821_v59 = vrot.slane %v799_v56, 7  ;;  %v2613_v4 = vor.u32 %v2705_v51, %v2610_v52 }
 0x173   :  { %v1892_v0 = vsel %vm1862_vm2, %v786_v55, %v1821_v59  ;;  %2572 = vmatmul.msk.bf16.vlgmr.msrb.gmra.mxu0 %vm303_vm4, %v3126_v57  ;;  %2573 = vmatmul.msk.bf16.vlgmr.msrb.gmra.mxu1 %vm303_vm4, %v3126_v57 }
 0x174   :  { %v1954_v3 = vadd.f32 %v1892_v0, %v242_v58  ;;  %2574 = vmatmul.msk.bf16.vlgmr.msrb.gmra.mxu2 %vm303_vm4, %v3126_v57  ;;  %2575 = vmatmul.msk.bf16.vlgmr.msrb.gmra.mxu3 %vm303_vm4, %v3126_v57  ;;  %v3181_v0 = vpack.c.bf16 %v2231_v31, %v2231_v31 }
 0x175   :  { %1608 = vmatpush.bf16.msrb.mxu3 %v2589_v60  ;;  %1595 = vmatpush.bf16.msrb.mxu2 %v2585_v61 }
 0x176   :  { %1974 = vst.msk [vmem:[#allocation5 + $0x1c] sm:$0x3] %vm2830_vm0, %v1954_v3  ;;  %1516 = vmatpush.bf16.msrb.mxu0 %v2567_v62  ;;  %1529 = vmatpush.bf16.msrb.mxu1 %v2571_v63  ;;  %v2621_v62 = vor.u32 %v2706_v41, %v2618_v42  ;;  %v2609_v3 = vor.u32 %v2710_v50, %v2608_v47 }
 0x177   :  { %v3141_v7 = vpop.f32.mrf.mxu2  ;;  %v3143_v8 = vpop.f32.mrf.mxu3 }
 0x178   :  { %v788_v15 = vpop.f32.mrf.mxu0  ;;  %v801_v16 = vpop.f32.mrf.mxu1  ;;  %v1822_v38 = vrot.slane %v3143_v8, 7  ;;  %v2120_v8 = vor.u32 1.1754944e-38, %v2119_v32 }
 0x17a   :  { %v1893_v15 = vsel %vm1862_vm2, %v3141_v7, %v1822_v38 }
 0x17d   :  { %v1993_v6 = vld [vmem:[#allocation5 + $0x1c] sm:$0x3] }
 0x17e   :  { %v2107_v19 = vmul.f32 %v2105_v44, %v1993_v6  ;;  %v2616_v44 = vld [vmem:[#allocation2 + $0x250] sm:$0xf]  ;;  %v2116_v6 = vsel %vm3177_vm15, %v3148_v23, %v2112_v53 }
 0x17f   :  { %v867_v13 = vpop.f32.mrf.mxu2  ;;  %v880_v37 = vpop.f32.mrf.mxu3  ;;  %v2617_v63 = vor.u32 %v2711_v46, %v2616_v44 }
 0x180   :  { %2193 = vst.msk [vmem:[#allocation5 + $0x1c] sm:$0x3] %vm2830_vm0, %v2107_v19  ;;  %v891_v22 = vpop.f32.mrf.mxu0  ;;  %v904_v14 = vpop.f32.mrf.mxu1 }
 0x181   :  { %v1823_v39 = vrot.slane %v891_v22, 6  ;;  %v1824_v40 = vrot.slane %v904_v14, 5  ;;  %v2041_v14 = vperm.slane %v2039_v21, 0 }
 0x183   :  { %2576 = vmatmul.msk.bf16.vlgmr.msra.gmra.mxu0 %vm303_vm4, %v3126_v57  ;;  %2577 = vmatmul.msk.bf16.vlgmr.msra.gmra.mxu1 %vm303_vm4, %v3126_v57  ;;  %v1894_v55 = vsel %vm1864_vm14, %v1823_v39, %v1824_v40  ;;  %2731 = vrcp.f32 %v2041_v14  ;;  %vm2129_vm11 = vweird.f32 %v2041_v14 }
 0x184   :  { %2578 = vmatmul.msk.bf16.vlgmr.msra.gmra.mxu2 %vm303_vm4, %v3126_v57  ;;  %2579 = vmatmul.msk.bf16.vlgmr.msra.gmra.mxu3 %vm303_vm4, %v3126_v57  ;;  %v1895_v17 = vsel %vm1866_vm3, %v1893_v15, %v1894_v55  ;;  %v2133_v55 = vand.u32 2147483647, %v2041_v14 }
 0x185   :  { %1660 = vmatpush.bf16.msra.mxu3 %v2605_v25  ;;  %1647 = vmatpush.bf16.msra.mxu2 %v2601_v26 }
 0x186   :  { %1621 = vmatpush.bf16.msra.mxu0 %v2593_v27  ;;  %1634 = vmatpush.bf16.msra.mxu1 %v2597_v28 }
 0x187   :  { %v917_v1 = vpop.f32.mrf.mxu2  ;;  %v930_v30 = vpop.f32.mrf.mxu3 }
 0x188   :  { %v893_v34 = vpop.f32.mrf.mxu0  ;;  %v906_v35 = vpop.f32.mrf.mxu1  ;;  %v1825_v43 = vrot.slane %v917_v1, 4  ;;  %v1826_v45 = vrot.slane %v930_v30, 3 }
 0x189   :  { %v2732_v30 = vpop.eup %2731 }
 0x18a   :  { %v1896_v16 = vsel %vm1868_vm5, %v1825_v43, %v1826_v45  ;;  %v2125_v35 = vmul.f32 %v2732_v30, %v2041_v14  ;;  %vm2130_vm9 = vweird.f32 %v2732_v30 }
 0x18b   :  { %vm2131_vm12 = vmor %vm2129_vm11, %vm2130_vm9 }
 0x18c   :  { %v2126_v31 = vsub.f32 1.0, %v2125_v35 }
 0x18e   :  { %v2127_v40 = vmul.f32 %v2732_v30, %v2126_v31 }
 0x18f   :  { %v919_v10 = vpop.f32.mrf.mxu2  ;;  %v932_v48 = vpop.f32.mrf.mxu3 }
 0x190   :  { %v943_v56 = vpop.f32.mrf.mxu0  ;;  %v956_v58 = vpop.f32.mrf.mxu1  ;;  %v2128_v46 = vadd.f32 %v2732_v30, %v2127_v40  ;;  %v2135_v48 = vand.u32 2147483648, %v2041_v14 }
 0x191   :  { %v1827_v60 = vrot.slane %v943_v56, 2  ;;  %v1828_v61 = vrot.slane %v956_v58, 1 }
 0x193   :  { %v1897_v5 = vsel %vm1870_vm6, %v1827_v60, %v1828_v61  ;;  %2580 = vmatmul.msk.bf16.vlgmr.msrb.gmra.mxu0 %vm303_vm4, %v3126_v57  ;;  %2581 = vmatmul.msk.bf16.vlgmr.msrb.gmra.mxu1 %vm303_vm4, %v3126_v57  ;;  %v2121_v57 = vsel %vm2118_vm8, %v2120_v8, %v2116_v6  ;;  %v2132_v60 = vsel %vm2131_vm12, %v2732_v30, %v2128_v46  ;;  %v246_v6 = vld [vmem:[#allocation5 + $0x30] sm:$0x3] }
 0x194   :  { %v1898_v18 = vsel %vm1872_vm7, %v1896_v16, %v1897_v5  ;;  %2622 = vmatmul.msk.bf16.vlgmr.msrb.gmra.mxu2 %vm303_vm4, %v3181_v0  ;;  %2623 = vmatmul.msk.bf16.vlgmr.msrb.gmra.mxu3 %vm303_vm4, %v3181_v0 }
 0x195   :  { %v1899_v7 = vsel %vm1874_vm10, %v1895_v17, %v1898_v18  ;;  %1712 = vmatpush.bf16.msrb.mxu3 %v2621_v62  ;;  %1699 = vmatpush.bf16.msrb.mxu2 %v2617_v63  ;;  %v2136_v63 = vor.u32 1.1754944e-38, %v2135_v48 }
 0x196   :  { %1673 = vmatpush.bf16.msrb.mxu0 %v2609_v3  ;;  %1686 = vmatpush.bf16.msrb.mxu1 %v2613_v4  ;;  %v2122_v2 = vmul.f32 %v2121_v57, %v1899_v7  ;;  %v2045_v7 = vpop.permute.xlu1 %2044 }
 0x197   :  { %v969_v19 = vpop.f32.mrf.mxu2  ;;  %v982_v12 = vpop.f32.mrf.mxu3 }
 0x198   :  { %v1829_v13 = vrot.slane %v982_v12, 7  ;;  %v945_v37 = vpop.f32.mrf.mxu0  ;;  %v958_v20 = vpop.f32.mrf.mxu1  ;;  %2194 = vst [vmem:[#allocation5 + $0x1e] sm:$0xff] %v2122_v2 }
 0x19a   :  { %v1900_v54 = vsel %vm1862_vm2, %v969_v19, %v1829_v13  ;;  %v2047_v19 = vperm.slane %v2045_v7, 0 }
 0x19b   :  { %v1956_v22 = vadd.f32 %v1900_v54, %v244_v11 }
 0x19c   :  { %2733 = vrcp.f32 %v2047_v19  ;;  %vm2145_vm13 = vweird.f32 %v2047_v19  ;;  %v2149_v40 = vand.u32 2147483647, %v2047_v19 }
 0x19d   :  { %1976 = vst.msk [vmem:[#allocation5 + $0x26] sm:$0x3] %vm2830_vm0, %v1956_v22 }
 0x19e   :  { %vm2150_vm8 = vcmp.eq.f32.partialorder %v2149_v40, 8.507059e+37 }
 0x19f   :  { %v971_v23 = vpop.f32.mrf.mxu2  ;;  %v984_v24 = vpop.f32.mrf.mxu3 }
 0x1a0   :  { %v1048_v25 = vpop.f32.mrf.mxu0  ;;  %v1061_v26 = vpop.f32.mrf.mxu1 }
 0x1a1   :  { %v1830_v44 = vrot.slane %v1061_v26, 7 }
 0x1a2   :  { %v2734_v23 = vpop.eup %2733 }
 0x1a3   :  { %2624 = vmatmul.msk.bf16.vlgmr.msra.gmra.mxu0 %vm303_vm4, %v3181_v0  ;;  %2625 = vmatmul.msk.bf16.vlgmr.msra.gmra.mxu1 %vm303_vm4, %v3181_v0  ;;  %v1901_v56 = vsel %vm1862_vm2, %v1048_v25, %v1830_v44  ;;  %v2141_v24 = vmul.f32 %v2734_v23, %v2047_v19  ;;  %vm2146_vm1 = vweird.f32 %v2734_v23 }
 0x1a4   :  { %v1995_v27 = vld [vmem:[#allocation5 + $0x26] sm:$0x3]  ;;  %2626 = vmatmul.msk.bf16.vlgmr.msra.gmra.mxu2 %vm303_vm4, %v3181_v0  ;;  %2627 = vmatmul.msk.bf16.vlgmr.msra.gmra.mxu3 %vm303_vm4, %v3181_v0  ;;  %vm2147_vm15 = vmor %vm2145_vm13, %vm2146_vm1 }
 0x1a5   :  { %v2123_v28 = vmul.f32 %v2121_v57, %v1995_v27  ;;  %v2142_v27 = vsub.f32 1.0, %v2141_v24 }
 0x1a7   :  { %2195 = vst.msk [vmem:[#allocation5 + $0x26] sm:$0x3] %vm2830_vm0, %v2123_v28  ;;  %v1074_v29 = vpop.f32.mrf.mxu2  ;;  %v1087_v1 = vpop.f32.mrf.mxu3 }
 0x1a8   :  { %v1050_v33 = vpop.f32.mrf.mxu0  ;;  %v1063_v34 = vpop.f32.mrf.mxu1  ;;  %v1831_v41 = vrot.slane %v1074_v29, 6  ;;  %v1832_v42 = vrot.slane %v1087_v1, 5  ;;  %v2143_v1 = vmul.f32 %v2734_v23, %v2142_v27 }
 0x1a9   :  { %v2151_v34 = vand.u32 2147483648, %v2047_v19 }
 0x1aa   :  { %v1902_v50 = vsel %vm1864_vm14, %v1831_v41, %v1832_v42 }
 0x1ab   :  { %v1903_v61 = vsel %vm1866_vm3, %v1901_v56, %v1902_v50  ;;  %v2152_v46 = vor.u32 1.1754944e-38, %v2151_v34 }
 0x1af   :  { %v1076_v32 = vpop.f32.mrf.mxu2  ;;  %v1089_v36 = vpop.f32.mrf.mxu3 }
 0x1b0   :  { %v1100_v38 = vpop.f32.mrf.mxu0  ;;  %v1113_v39 = vpop.f32.mrf.mxu1 }
 0x1b1   :  { %v1833_v43 = vrot.slane %v1100_v38, 4  ;;  %v1834_v45 = vrot.slane %v1113_v39, 3  ;;  %v2144_v39 = vadd.f32 %v2734_v23, %v2143_v1 }
 0x1b3   :  { %2628 = vmatmul.msk.bf16.vlgmr.msrb.gmra.mxu0 %vm303_vm4, %v3181_v0  ;;  %2629 = vmatmul.msk.bf16.vlgmr.msrb.gmra.mxu1 %vm303_vm4, %v3181_v0  ;;  %v1904_v58 = vsel %vm1868_vm5, %v1833_v43, %v1834_v45  ;;  %v2148_v50 = vsel %vm2147_vm15, %v2734_v23, %v2144_v39 }
 0x1b4   :  { %2630 = vmatmul.msk.bf16.vlgmr.msrb.gmra.mxu2 %vm303_vm4, %v3181_v0  ;;  %2631 = vmatmul.msk.bf16.vlgmr.msrb.gmra.mxu3 %vm303_vm4, %v3181_v0  ;;  %vm2134_vm4 = vcmp.eq.f32.partialorder %v2133_v55, 8.507059e+37 }
 0x1b5   :  { %v2137_v3 = vsel %vm2134_vm4, %v2136_v63, %v2132_v60 }
 0x1b7   :  { %v1126_v47 = vpop.f32.mrf.mxu2  ;;  %v1139_v10 = vpop.f32.mrf.mxu3 }
 0x1b8   :  { %v1835_v51 = vrot.slane %v1126_v47, 2  ;;  %v1836_v52 = vrot.slane %v1139_v10, 1  ;;  %v1102_v53 = vpop.f32.mrf.mxu0  ;;  %v1115_v49 = vpop.f32.mrf.mxu1 }
 0x1b9   :  { %v2153_v49 = vsel %vm2150_vm8, %v2152_v46, %v2148_v50 }
 0x1ba   :  { %v1905_v59 = vsel %vm1870_vm6, %v1835_v51, %v1836_v52 }
 0x1bb   :  { %v1906_v62 = vsel %vm1872_vm7, %v1904_v58, %v1905_v59  ;;  %v248_v59 = vld [vmem:[#allocation5 + $0x3a] sm:$0x3] }
 0x1bc   :  { %v1907_v0 = vsel %vm1874_vm10, %v1903_v61, %v1906_v62 }
 0x1bd   :  { %v2138_v4 = vmul.f32 %v2137_v3, %v1907_v0  ;;  %v2051_v0 = vpop.permute.xlu2 %2050 }
 0x1bf   :  { %v1128_v8 = vpop.f32.mrf.mxu2  ;;  %v1141_v15 = vpop.f32.mrf.mxu3  ;;  %2196 = vst [vmem:[#allocation5 + $0x28] sm:$0xff] %v2138_v4  ;;  %v2053_v4 = vperm.slane %v2051_v0, 0 }
 0x1c0   :  { %v1152_v16 = vpop.f32.mrf.mxu0  ;;  %v1165_v5 = vpop.f32.mrf.mxu1 }
 0x1c1   :  { %v1837_v17 = vrot.slane %v1165_v5, 7  ;;  %2735 = vrcp.f32 %v2053_v4  ;;  %vm2161_vm9 = vweird.f32 %v2053_v4  ;;  %v2167_v23 = vand.u32 2147483648, %v2053_v4 }
 0x1c3   :  { %v1908_v18 = vsel %vm1862_vm2, %v1152_v16, %v1837_v17 }
 0x1c4   :  { %v1958_v57 = vadd.f32 %v1908_v18, %v246_v6 }
 0x1c6   :  { %1978 = vst.msk [vmem:[#allocation5 + $0x30] sm:$0x3] %vm2830_vm0, %v1958_v57 }
 0x1c7   :  { %v1231_v12 = vpop.f32.mrf.mxu2  ;;  %v1244_v2 = vpop.f32.mrf.mxu3 }
 0x1c8   :  { %v1154_v11 = vpop.f32.mrf.mxu0  ;;  %v1167_v13 = vpop.f32.mrf.mxu1  ;;  %v1838_v35 = vrot.slane %v1244_v2, 7 }
 0x1c9   :  { %v2736_v57 = vpop.eup %2735 }
 0x1ca   :  { %v1909_v47 = vsel %vm1862_vm2, %v1231_v12, %v1838_v35  ;;  %v2157_v2 = vmul.f32 %v2736_v57, %v2053_v4  ;;  %vm2162_vm11 = vweird.f32 %v2736_v57 }
 0x1cb   :  { %vm3246_vm12 = vmor %vm2161_vm9, %vm2162_vm11 }
 0x1cc   :  { %v2158_v11 = vsub.f32 1.0, %v2157_v2 }
 0x1cd   :  { %v1997_v37 = vld [vmem:[#allocation5 + $0x30] sm:$0x3] }
 0x1ce   :  { %v2139_v20 = vmul.f32 %v2137_v3, %v1997_v37 }
 0x1cf   :  { %v1233_v54 = vpop.f32.mrf.mxu2  ;;  %v1246_v21 = vpop.f32.mrf.mxu3 }
 0x1d0   :  { %2197 = vst.msk [vmem:[#allocation5 + $0x30] sm:$0x3] %vm2830_vm0, %v2139_v20  ;;  %v1257_v22 = vpop.f32.mrf.mxu0  ;;  %v1270_v14 = vpop.f32.mrf.mxu1  ;;  %v2159_v21 = vmul.f32 %v2736_v57, %v2158_v11 }
 0x1d1   :  { %v1839_v30 = vrot.slane %v1257_v22, 6  ;;  %v1840_v33 = vrot.slane %v1270_v14, 5 }
 0x1d2   :  { %v2160_v27 = vadd.f32 %v2736_v57, %v2159_v21 }
 0x1d3   :  { %v1910_v44 = vsel %vm1864_vm14, %v1839_v30, %v1840_v33 }
 0x1d4   :  { %v1911_v51 = vsel %vm1866_vm3, %v1909_v47, %v1910_v44 }
 0x1d7   :  { %v1283_v25 = vpop.f32.mrf.mxu2  ;;  %v1296_v26 = vpop.f32.mrf.mxu3 }
 0x1d8   :  { %v1259_v28 = vpop.f32.mrf.mxu0  ;;  %v1272_v29 = vpop.f32.mrf.mxu1  ;;  %v1841_v31 = vrot.slane %v1283_v25, 4  ;;  %v1842_v32 = vrot.slane %v1296_v26, 3 }
 0x1d9   :  { %v2165_v28 = vand.u32 2147483647, %v2053_v4 }
 0x1da   :  { %v1912_v10 = vsel %vm1868_vm5, %v1841_v31, %v1842_v32 }
 0x1db   :  { %vm2166_vm4 = vcmp.eq.f32.partialorder %v2165_v28, 8.507059e+37 }
 0x1df   :  { %v1285_v36 = vpop.f32.mrf.mxu2  ;;  %v1298_v38 = vpop.f32.mrf.mxu3 }
 0x1e0   :  { %v1309_v41 = vpop.f32.mrf.mxu0  ;;  %v1322_v42 = vpop.f32.mrf.mxu1  ;;  %v2168_v36 = vor.u32 1.1754944e-38, %v2167_v23 }
 0x1e1   :  { %v1843_v43 = vrot.slane %v1309_v41, 2  ;;  %v1844_v45 = vrot.slane %v1322_v42, 1  ;;  %v2164_v41 = vsel %vm3246_vm12, %v2736_v57, %v2160_v27 }
 0x1e3   :  { %v1913_v48 = vsel %vm1870_vm6, %v1843_v43, %v1844_v45  ;;  %v2169_v45 = vsel %vm2166_vm4, %v2168_v36, %v2164_v41 }
 0x1e4   :  { %v1914_v52 = vsel %vm1872_vm7, %v1912_v10, %v1913_v48 }
 0x1e5   :  { %v1915_v53 = vsel %vm1874_vm10, %v1911_v51, %v1914_v52  ;;  %v250_v51 = vld [vmem:[#allocation5 + $0x44] sm:$0x3] }
 0x1e6   :  { %v2154_v58 = vmul.f32 %v2153_v49, %v1915_v53 }
 0x1e7   :  { %v1335_v55 = vpop.f32.mrf.mxu2  ;;  %v1348_v56 = vpop.f32.mrf.mxu3 }
 0x1e8   :  { %v1845_v60 = vrot.slane %v1348_v56, 7  ;;  %v1311_v61 = vpop.f32.mrf.mxu0  ;;  %v1324_v62 = vpop.f32.mrf.mxu1  ;;  %2198 = vst [vmem:[#allocation5 + $0x32] sm:$0xff] %v2154_v58 }
 0x1ea   :  { %v1916_v63 = vsel %vm1862_vm2, %v1335_v55, %v1845_v60 }
 0x1eb   :  { %v1960_v3 = vadd.f32 %v1916_v63, %v248_v59 }
 0x1ed   :  { %1980 = vst.msk [vmem:[#allocation5 + $0x3a] sm:$0x3] %vm2830_vm0, %v1960_v3 }
 0x1ef   :  { %v1337_v8 = vpop.f32.mrf.mxu2  ;;  %v1350_v15 = vpop.f32.mrf.mxu3 }
 0x1f0   :  { %v1414_v16 = vpop.f32.mrf.mxu0  ;;  %v1427_v5 = vpop.f32.mrf.mxu1 }
 0x1f1   :  { %v1846_v24 = vrot.slane %v1427_v5, 7 }
 0x1f3   :  { %v1917_v38 = vsel %vm1862_vm2, %v1414_v16, %v1846_v24 }
 0x1f4   :  { %v1999_v6 = vld [vmem:[#allocation5 + $0x3a] sm:$0x3] }
 0x1f5   :  { %v2155_v17 = vmul.f32 %v2153_v49, %v1999_v6  ;;  %v2057_v49 = vpop.permute.xlu0 %2056 }
 0x1f6   :  { %v2059_v56 = vperm.slane %v2057_v49, 0 }
 0x1f7   :  { %2199 = vst.msk [vmem:[#allocation5 + $0x3a] sm:$0x3] %vm2830_vm0, %v2155_v17  ;;  %v1440_v18 = vpop.f32.mrf.mxu2  ;;  %v1453_v7 = vpop.f32.mrf.mxu3 }
 0x1f8   :  { %v1416_v19 = vpop.f32.mrf.mxu0  ;;  %v1429_v12 = vpop.f32.mrf.mxu1  ;;  %v1847_v22 = vrot.slane %v1440_v18, 6  ;;  %v1848_v14 = vrot.slane %v1453_v7, 5  ;;  %2737 = vrcp.f32 %v2059_v56  ;;  %vm2177_vm1 = vweird.f32 %v2059_v56 }
 0x1fa   :  { %v1918_v33 = vsel %vm1864_vm14, %v1847_v22, %v1848_v14  ;;  %v2183_v14 = vand.u32 2147483648, %v2059_v56 }
 0x1fb   :  { %v1919_v42 = vsel %vm1866_vm3, %v1917_v38, %v1918_v33 }
 0x1fe   :  { %v2738_v15 = vpop.eup %2737 }
 0x1ff   :  { %v1442_v13 = vpop.f32.mrf.mxu2  ;;  %v1455_v37 = vpop.f32.mrf.mxu3  ;;  %v2173_v16 = vmul.f32 %v2738_v15, %v2059_v56  ;;  %vm2178_vm13 = vweird.f32 %v2738_v15 }
 0x200   :  { %v1466_v20 = vpop.f32.mrf.mxu0  ;;  %v1479_v54 = vpop.f32.mrf.mxu1  ;;  %vm2179_vm15 = vmor %vm2177_vm1, %vm2178_vm13 }
 0x201   :  { %v1849_v25 = vrot.slane %v1466_v20, 4  ;;  %v1850_v26 = vrot.slane %v1479_v54, 3  ;;  %v2174_v17 = vsub.f32 1.0, %v2173_v16 }
 0x203   :  { %v1920_v39 = vsel %vm1868_vm5, %v1849_v25, %v1850_v26  ;;  %v2175_v57 = vmul.f32 %v2738_v15, %v2174_v17  ;;  %v2181_v26 = vand.u32 2147483647, %v2059_v56 }
 0x205   :  { %v2176_v54 = vadd.f32 %v2738_v15, %v2175_v57 }
 0x207   :  { %v1492_v29 = vpop.f32.mrf.mxu2  ;;  %v1505_v1 = vpop.f32.mrf.mxu3 }
 0x208   :  { %v1851_v34 = vrot.slane %v1492_v29, 2  ;;  %v1852_v35 = vrot.slane %v1505_v1, 1  ;;  %v1468_v31 = vpop.f32.mrf.mxu0  ;;  %v1481_v32 = vpop.f32.mrf.mxu1  ;;  %v2180_v1 = vsel %vm2179_vm15, %v2738_v15, %v2176_v54 }
 0x20a   :  { %v1921_v40 = vsel %vm1870_vm6, %v1851_v34, %v1852_v35  ;;  %v2184_v34 = vor.u32 1.1754944e-38, %v2183_v14 }
 0x20b   :  { %v1922_v44 = vsel %vm1872_vm7, %v1920_v39, %v1921_v40  ;;  %v252_v39 = vld [vmem:[#allocation5 + $0x4e] sm:$0x3] }
 0x20c   :  { %v1923_v43 = vsel %vm1874_vm10, %v1919_v42, %v1922_v44 }
 0x20d   :  { %v2170_v46 = vmul.f32 %v2169_v45, %v1923_v43 }
 0x20f   :  { %v1494_v47 = vpop.f32.mrf.mxu2  ;;  %v1507_v10 = vpop.f32.mrf.mxu3  ;;  %2200 = vst [vmem:[#allocation5 + $0x3c] sm:$0xff] %v2170_v46 }
 0x210   :  { %v1518_v48 = vpop.f32.mrf.mxu0  ;;  %v1531_v50 = vpop.f32.mrf.mxu1 }
 0x211   :  { %v1853_v52 = vrot.slane %v1531_v50, 7 }
 0x213   :  { %v1924_v53 = vsel %vm1862_vm2, %v1518_v48, %v1853_v52 }
 0x214   :  { %v1962_v55 = vadd.f32 %v1924_v53, %v250_v51 }
 0x216   :  { %1982 = vst.msk [vmem:[#allocation5 + $0x44] sm:$0x3] %vm2830_vm0, %v1962_v55 }
 0x217   :  { %v1597_v58 = vpop.f32.mrf.mxu2  ;;  %v1610_v59 = vpop.f32.mrf.mxu3 }
 0x218   :  { %v1520_v60 = vpop.f32.mrf.mxu0  ;;  %v1533_v61 = vpop.f32.mrf.mxu1  ;;  %v1854_v2 = vrot.slane %v1610_v59, 7 }
 0x21a   :  { %v1925_v27 = vsel %vm1862_vm2, %v1597_v58, %v1854_v2 }
 0x21d   :  { %v2001_v62 = vld [vmem:[#allocation5 + $0x44] sm:$0x3] }
 0x21e   :  { %v2171_v63 = vmul.f32 %v2169_v45, %v2001_v62 }
 0x21f   :  { %v1599_v0 = vpop.f32.mrf.mxu2  ;;  %v1612_v3 = vpop.f32.mrf.mxu3 }
 0x220   :  { %2201 = vst.msk [vmem:[#allocation5 + $0x44] sm:$0x3] %vm2830_vm0, %v2171_v63  ;;  %v1623_v4 = vpop.f32.mrf.mxu0  ;;  %v1636_v8 = vpop.f32.mrf.mxu1 }
 0x221   :  { %v1855_v19 = vrot.slane %v1623_v4, 6  ;;  %v1856_v12 = vrot.slane %v1636_v8, 5 }
 0x223   :  { %v1926_v23 = vsel %vm1864_vm14, %v1855_v19, %v1856_v12  ;;  %vm2182_vm14 = vcmp.eq.f32.partialorder %v2181_v26, 8.507059e+37 }
 0x224   :  { %v1927_v30 = vsel %vm1866_vm3, %v1925_v27, %v1926_v23  ;;  %v2185_v31 = vsel %vm2182_vm14, %v2184_v34, %v2180_v1 }
 0x227   :  { %v1649_v5 = vpop.f32.mrf.mxu2  ;;  %v1662_v6 = vpop.f32.mrf.mxu3 }
 0x228   :  { %v1625_v18 = vpop.f32.mrf.mxu0  ;;  %v1638_v7 = vpop.f32.mrf.mxu1  ;;  %v1857_v11 = vrot.slane %v1649_v5, 4  ;;  %v1858_v13 = vrot.slane %v1662_v6, 3 }
 0x22a   :  { %v1928_v28 = vsel %vm1868_vm5, %v1857_v11, %v1858_v13 }
 0x22f   :  { %v1651_v37 = vpop.f32.mrf.mxu2  ;;  %v1664_v20 = vpop.f32.mrf.mxu3 }
 0x230   :  { %v1675_v21 = vpop.f32.mrf.mxu0  ;;  %v1688_v22 = vpop.f32.mrf.mxu1 }
 0x231   :  { %v1859_v24 = vrot.slane %v1675_v21, 2  ;;  %v1860_v25 = vrot.slane %v1688_v22, 1 }
 0x233   :  { %v1929_v29 = vsel %vm1870_vm6, %v1859_v24, %v1860_v25 }
 0x234   :  { %v1930_v33 = vsel %vm1872_vm7, %v1928_v28, %v1929_v29 }
 0x235   :  { %v1931_v35 = vsel %vm1874_vm10, %v1927_v30, %v1930_v33 }
 0x236   :  { %v2186_v38 = vmul.f32 %v2185_v31, %v1931_v35 }
 0x237   :  { %v1701_v32 = vpop.f32.mrf.mxu2  ;;  %v1714_v36 = vpop.f32.mrf.mxu3 }
 0x238   :  { %v1861_v40 = vrot.slane %v1714_v36, 7  ;;  %v1677_v41 = vpop.f32.mrf.mxu0  ;;  %v1690_v42 = vpop.f32.mrf.mxu1  ;;  %2202 = vst [vmem:[#allocation5 + $0x46] sm:$0xff] %v2186_v38 }
 0x23a   :  { %v1932_v44 = vsel %vm1862_vm2, %v1701_v32, %v1861_v40 }
 0x23b   :  { %v1964_v43 = vadd.f32 %v1932_v44, %v252_v39 }
 0x23d   :  { %1984 = vst.msk [vmem:[#allocation5 + $0x4e] sm:$0x3] %vm2830_vm0, %v1964_v43 }
 0x23f   :  { %v1703_v45 = vpop.f32.mrf.mxu2  ;;  %v1716_v46 = vpop.f32.mrf.mxu3 }
 0x244   :  { %v2003_v47 = vld [vmem:[#allocation5 + $0x4e] sm:$0x3] }
 0x245   :  { %v2187_v10 = vmul.f32 %v2185_v31, %v2003_v47 }
 0x247   :  { %2203 = vst.msk [vmem:[#allocation5 + $0x4e] sm:$0x3] %vm2830_vm0, %v2187_v10 }
 0x248   :  { %2216 = dma.vmem_to_hbm [thread:$0]  %s2209_s1, 1280, %s2211_s20, [#allocation4], %s2797_s21, %s2797_s21, %s2798_s22  }
 0x249   :  { %2789 = dma.done.wait [#allocation4], 1280  }
 0x24a   :  { %2790 = vsyncadd [#allocation4], 4294966016 }
 0x24b   :  { %2221 = vsyncpa [#allocation3], 1 }
 0x24c   :  { %2222 = vsyncpa [#allocation4], 1 }

</bundles_post_ra>
